<compile_context>
chip_gen: v6e
topology: v6e:2x2x1
jax: 0.10.0
libtpu: 0.0.40
codegen_flags: <defaults>
</compile_context>

<pallas_src>
import functools
from typing import NamedTuple

import numpy as np
import jax
import jax.numpy as jnp
from jax import lax
from jax.experimental import pallas as pl
from jax.experimental.pallas import tpu as pltpu

EPS = 1e-5                     # nn.InstanceNorm default eps
MATMUL_DTYPE = jnp.bfloat16    # MXU input dtype (f32 accumulation everywhere)


def _vmem():
    return pl.BlockSpec(memory_space=pltpu.MemorySpace.VMEM)


def _nbytes(a):
    return int(a.size) * a.dtype.itemsize


def _round_up(n, m):
    return -(-n // m) * m


# ---------------- config & layer plan (static) ----------------

class GenConfig(NamedTuple):
    nz: int
    nf: int
    ng_layers: int
    x_out: int
    y_out: int
    num_params: int
    num_channels: int
    kernel_size: int
    stride: int
    padding: int
    xm: int
    ym: int
    c0: int
    F: int


def make_config(*, nz, nf, ng_layers, x_out, y_out, num_params, num_channels,
                kernel_size=5, stride=2, padding=1):
    xm = x_out // (2 ** ng_layers)
    ym = y_out // (2 ** ng_layers)
    c0 = nf * (2 ** (ng_layers - 1))
    F = c0 * xm * ym
    return GenConfig(nz=nz, nf=nf, ng_layers=ng_layers, x_out=x_out, y_out=y_out,
                     num_params=num_params, num_channels=num_channels,
                     kernel_size=kernel_size, stride=stride, padding=padding,
                     xm=xm, ym=ym, c0=c0, F=F)


class LayerPlan(NamedTuple):
    cin: int
    cout: int
    h_in: int
    w_in: int
    in_block: int     # per-input-channel feature stride (H*W or previous P_pad)
    ho: int
    wo: int
    p_valid: int      # true number of (kept) output spatial positions
    p_pad: int        # lane-padded per-channel block width (multiple of 128)
    is_last: bool


def _layer_plan(cfg):
    plans = []
    H, W, cin, in_block = cfg.xm, cfg.ym, cfg.c0, cfg.xm * cfg.ym
    for ii in range(1, cfg.ng_layers + 1):
        is_last = ii == cfg.ng_layers
        cout = cfg.num_channels if is_last else cin // 2
        Ho = (H - 1) * cfg.stride - 2 * cfg.padding + cfg.kernel_size
        Wo = (W - 1) * cfg.stride - 2 * cfg.padding + cfg.kernel_size
        if is_last:
            assert Ho >= 1 + cfg.x_out and Wo >= 1 + cfg.y_out
            pv = cfg.x_out * cfg.y_out          # crop folded into the matrix
        else:
            pv = Ho * Wo
        pp = _round_up(pv, 128)
        plans.append(LayerPlan(cin=cin, cout=cout, h_in=H, w_in=W, in_block=in_block,
                               ho=Ho, wo=Wo, p_valid=pv, p_pad=pp, is_last=is_last))
        H, W, cin, in_block = Ho, Wo, cout, pp
    return tuple(plans)


# ---------------- weight folding (init-time, weights only) ----------------

def _fold_conv_transpose(w, b, H, W, stride, padding, in_block, p_pad, crop=None):
    """Fold a ConvTranspose2d (fixed HxW input) into a dense matrix.

    out[b, co*p_pad + (oy*sw + ox)] = sum_kin M[kin, ...] * act[b, kin] + brow
    with kin = ci*in_block + iy*W + ix (matching the previous layer's lane
    layout). Pad columns / pad input rows are exactly zero.
    ConvTranspose relation: oy = iy*stride - padding + ky (same for x).
    """
    w = np.asarray(w, np.float32)
    b = np.asarray(b, np.float32)
    cin, cout, k, _ = w.shape
    Ho = (H - 1) * stride - 2 * padding + k
    Wo = (W - 1) * stride - 2 * padding + k
    if crop is None:
        oy0, ox0, sh, sw = 0, 0, Ho, Wo
    else:
        oy0, ox0, sh, sw = crop
    P = sh * sw
    assert p_pad >= P and in_block >= H * W
    M = np.zeros((cin * in_block, cout * p_pad), np.float32)
    ci_idx = np.arange(cin)
    co_idx = np.arange(cout)
    for ky in range(k):
        for kx in range(k):
            for iy in range(H):
                oy = iy * stride - padding + ky - oy0
                if oy < 0 or oy >= sh:
                    continue
                for ix in range(W):
                    ox = ix * stride - padding + kx - ox0
                    if ox < 0 or ox >= sw:
                        continue
                    rows = ci_idx * in_block + iy * W + ix
                    cols = co_idx * p_pad + oy * sw + ox
                    M[np.ix_(rows, cols)] += w[:, :, ky, kx]
    brow = np.zeros((1, cout * p_pad), np.float32)
    for co in range(cout):
        brow[0, co * p_pad: co * p_pad + P] = b[co]
    return M, brow


# ---------------- parameters ----------------

def init_raw_params(key, cfg):
    """Raw params in torch layouts / torch-default-ish init."""
    ki = iter(jax.random.split(key, 4 + 4 * cfg.ng_layers))
    raw = {}
    lb = 1.0 / np.sqrt(cfg.nz)
    raw['lin_W'] = jax.random.uniform(next(ki), (cfg.F, cfg.nz), jnp.float32, -lb, lb)
    raw['lin_b'] = jax.random.uniform(next(ki), (cfg.F,), jnp.float32, -lb, lb)
    # torch: affine.weight.data[:, :num_features].normal_(1, .02) -- since
    # num_params < num_features this touches every column, so the whole
    # (2F, num_params) weight is ~N(1, 0.02) and the zero_() slice is empty;
    # the bias keeps the default nn.Linear init.
    ab = 1.0 / np.sqrt(cfg.num_params)
    raw['cin0_W'] = 1.0 + 0.02 * jax.random.normal(next(ki), (2 * cfg.F, cfg.num_params),
                                                   jnp.float32)
    raw['cin0_b'] = jax.random.uniform(next(ki), (2 * cfg.F,), jnp.float32, -ab, ab)
    convs = []
    cin = cfg.c0
    for ii in range(1, cfg.ng_layers + 1):
        cout = cfg.num_channels if ii == cfg.ng_layers else cin // 2
        cb = 1.0 / np.sqrt(cin * cfg.kernel_size ** 2)
        layer = {
            'W': jax.random.uniform(next(ki), (cin, cout, cfg.kernel_size, cfg.kernel_size),
                                    jnp.float32, -cb, cb),
            'b': jax.random.uniform(next(ki), (cout,), jnp.float32, -cb, cb),
        }
        if ii < cfg.ng_layers:
            layer['cin_W'] = 1.0 + 0.02 * jax.random.normal(next(ki), (2 * cout, cfg.num_params),
                                                            jnp.float32)
            layer['cin_b'] = jax.random.uniform(next(ki), (2 * cout,), jnp.float32, -ab, ab)
        convs.append(layer)
        cin = cout
    raw['convs'] = convs
    return raw


def prepare_kernel_weights(cfg, raw):
    """Fold/repack raw params into the kernel's lane-dense layouts (once)."""
    plan = _layer_plan(cfg)
    w = {
        'lin_w': jnp.asarray(raw['lin_W']).T.astype(MATMUL_DTYPE),            # (nz, F)
        'lin_b': jnp.asarray(raw['lin_b']).reshape(1, cfg.F).astype(jnp.float32),
        'cin0_wg': jnp.asarray(raw['cin0_W'][:cfg.F].T, jnp.float32),          # (np, F)
        'cin0_bg': jnp.asarray(raw['cin0_b'][:cfg.F].reshape(1, cfg.F), jnp.float32),
        'cin0_wb': jnp.asarray(raw['cin0_W'][cfg.F:].T, jnp.float32),
        'cin0_bb': jnp.asarray(raw['cin0_b'][cfg.F:].reshape(1, cfg.F), jnp.float32),
    }
    layers = []
    for lp, rl in zip(plan, raw['convs']):
        crop = (1, 1, cfg.x_out, cfg.y_out) if lp.is_last else None
        M, brow = _fold_conv_transpose(np.asarray(rl['W']), np.asarray(rl['b']),
                                       lp.h_in, lp.w_in, cfg.stride, cfg.padding,
                                       lp.in_block, lp.p_pad, crop)
        d = {'M': jnp.asarray(M).astype(MATMUL_DTYPE),
             'brow': jnp.asarray(brow, jnp.float32)}
        if not lp.is_last:
            C = lp.cout
            d['wg'] = jnp.asarray(np.asarray(rl['cin_W'])[:C].T, jnp.float32)  # (np, C)
            d['bg'] = jnp.asarray(np.asarray(rl['cin_b'])[:C].reshape(1, C), jnp.float32)
            d['wb'] = jnp.asarray(np.asarray(rl['cin_W'])[C:].T, jnp.float32)
            d['bb'] = jnp.asarray(np.asarray(rl['cin_b'])[C:].reshape(1, C), jnp.float32)
        layers.append(d)
    w['layers'] = layers
    return w


# ---------------- the single fused Pallas kernel ----------------

def _make_fused_kernel(cfg, plan):
    n_fix = 8
    n_layer_inputs = sum(2 if lp.is_last else 6 for lp in plan)

    def kernel(*refs):
        x = refs[0][...]                      # (B, nz) bf16
        yv = refs[1][...]                     # (B, num_params) f32
        lin_w = refs[2][...]
        lin_b = refs[3][...]
        w0g = refs[4][...]
        b0g = refs[5][...]
        w0b = refs[6][...]
        b0b = refs[7][...]
        out_ref = refs[n_fix + n_layer_inputs]
        scratch = refs[n_fix + n_layer_inputs + 1:]

        # --- Linear + ConditionalInstanceNorm1d + ReLU -------------------
        h = jnp.dot(x, lin_w, preferred_element_type=jnp.float32) + lin_b   # (B, F)
        mu = jnp.mean(h, axis=-1, keepdims=True)
        var = jnp.mean((h - mu) ** 2, axis=-1, keepdims=True)
        hn = (h - mu) * jax.lax.rsqrt(var + EPS)
        g, bt = b0g, b0b
        for kk in range(cfg.num_params):       # K=4 -> VPU FMA chain, not MXU
            g = g + yv[:, kk:kk + 1] * w0g[kk:kk + 1, :]
            bt = bt + yv[:, kk:kk + 1] * w0b[kk:kk + 1, :]
        h = jnp.maximum(g * hn + bt, 0.0)       # ReLU (View is pure layout)
        h_mm = h.astype(MATMUL_DTYPE)           # (B, c0*xm*ym)

        # --- folded ConvTranspose layers ----------------------------------
        ri = n_fix
        si = 0
        for lp in plan:
            M = refs[ri][...]
            brow = refs[ri + 1][...]
            ri += 2
            # One lane-dense GEMM per layer: (B, Kin) @ (Kin, Cout*P_pad).
            pre = jnp.dot(h_mm, M, preferred_element_type=jnp.float32) + brow
            if lp.is_last:
                out_ref[...] = jnp.maximum(pre, 0.0)        # 'Last' ReLU
            else:
                wg = refs[ri][...]
                bg = refs[ri + 1][...]
                wb = refs[ri + 2][...]
                bb = refs[ri + 3][...]
                ri += 4
                g, bt = bg, bb                               # (B, cout)
                for kk in range(cfg.num_params):
                    g = g + yv[:, kk:kk + 1] * wg[kk:kk + 1, :]
                    bt = bt + yv[:, kk:kk + 1] * wb[kk:kk + 1, :]
                pp, pv = lp.p_pad, lp.p_valid
                mask = (lax.broadcasted_iota(jnp.int32, (1, pp), 1) < pv
                        ).astype(jnp.float32)
                inv_n = jnp.float32(1.0 / pv)                # true-P divisor
                h_ref = scratch[si]
                si += 1
                # InstanceNorm2d per channel over 128-aligned lane blocks.
                for c in range(lp.cout):
                    blk = pre[:, c * pp:(c + 1) * pp]        # (B, pp), aligned
                    mu_c = jnp.sum(blk * mask, axis=-1, keepdims=True) * inv_n
                    cen = (blk - mu_c) * mask
                    var_c = jnp.sum(cen * cen, axis=-1, keepdims=True) * inv_n
                    nrm = cen * jax.lax.rsqrt(var_c + EPS)
                    o = jnp.maximum(g[:, c:c + 1] * nrm + bt[:, c:c + 1], 0.0) * mask
                    h_ref[:, c * pp:(c + 1) * pp] = o.astype(MATMUL_DTYPE)
                h_mm = h_ref[...]                            # bf16 for next GEMM

    return kernel


# ---------------- forward ----------------

@functools.partial(jax.jit, static_argnums=0)
def generator_forward(cfg, weights, x, y):
    # x: (B, 1, nz), y: (B, num_params). Returns NCHW (B, num_channels, x_out, y_out).
    B = x.shape[0]
    plan = _layer_plan(cfg)
    x2 = x.reshape(B, cfg.nz).astype(MATMUL_DTYPE)
    yf = y.astype(jnp.float32)

    args = [x2, yf, weights['lin_w'], weights['lin_b'],
            weights['cin0_wg'], weights['cin0_bg'], weights['cin0_wb'], weights['cin0_bb']]
    for lp, lw in zip(plan, weights['layers']):
        args += [lw['M'], lw['brow']]
        if not lp.is_last:
            args += [lw['wg'], lw['bg'], lw['wb'], lw['bb']]

    last = plan[-1]
    out_cols = last.cout * last.p_pad
    scratch_shapes = [pltpu.VMEM((B, lp.cout * lp.p_pad), MATMUL_DTYPE)
                      for lp in plan if not lp.is_last]

    flops = 2 * B * cfg.nz * cfg.F + 12 * B * cfg.F
    trans = B
    for lp in plan:
        flops += 2 * B * (lp.cin * lp.in_block) * (lp.cout * lp.p_pad)
        flops += 10 * B * lp.cout * lp.p_pad
        if not lp.is_last:
            trans += B * lp.cout
    bytes_accessed = sum(_nbytes(a) for a in args) + B * out_cols * 4

    out = pl.pallas_call(
        _make_fused_kernel(cfg, plan),
        out_shape=jax.ShapeDtypeStruct((B, out_cols), jnp.float32),
        in_specs=[_vmem()] * len(args),
        out_specs=_vmem(),
        scratch_shapes=scratch_shapes,
        cost_estimate=pl.CostEstimate(flops=int(flops), transcendentals=int(trans),
                                      bytes_accessed=int(bytes_accessed)),
    )(*args)

    # Trailing reshape/slice is pure metadata glue on a tiny (B, 256) array.
    out = out.reshape(B, last.cout, last.p_pad)[:, :, :last.p_valid]
    return out.reshape(B, last.cout, cfg.x_out, cfg.y_out)


# ---------------- pure-JAX reference (for correctness check only) ----------------

def reference_forward(cfg, raw, x, y):
    B = x.shape[0]
    k, s, p = cfg.kernel_size, cfg.stride, cfg.padding
    h = x.reshape(B, cfg.nz).astype(jnp.bfloat16)
    h = jnp.dot(h, raw['lin_W'].T.astype(jnp.bfloat16),
                preferred_element_type=jnp.float32) + raw['lin_b'][None, :]
    mu = h.mean(-1, keepdims=True)
    var = ((h - mu) ** 2).mean(-1, keepdims=True)
    hn = (h - mu) / jnp.sqrt(var + EPS)
    aff = y @ raw['cin0_W'].T + raw['cin0_b']
    h = aff[:, :cfg.F] * hn + aff[:, cfg.F:]
    h = jnp.maximum(h, 0.0).reshape(B, cfg.c0, cfg.xm, cfg.ym)
    for ii, layer in enumerate(raw['convs'], start=1):
        W, b = layer['W'], layer['b']
        wref = jnp.transpose(W, (1, 0, 2, 3))[:, :, ::-1, ::-1]   # rot180 + (Cout,Cin)
        h = lax.conv_general_dilated(
            h.astype(jnp.bfloat16), wref.astype(jnp.bfloat16),
            window_strides=(1, 1), padding=[(k - 1 - p, k - 1 - p)] * 2,
            lhs_dilation=(s, s), dimension_numbers=('NCHW', 'OIHW', 'NCHW'),
            preferred_element_type=jnp.float32) + b[None, :, None, None]
        if ii < cfg.ng_layers:
            mu = h.mean((2, 3), keepdims=True)
            var = ((h - mu) ** 2).mean((2, 3), keepdims=True)
            hn = (h - mu) / jnp.sqrt(var + EPS)
            C = h.shape[1]
            aff = y @ layer['cin_W'].T + layer['cin_b']
            h = aff[:, :C, None, None] * hn + aff[:, C:, None, None]
        h = jnp.maximum(h, 0.0)
    return h[:, :, 1:1 + cfg.x_out, 1:1 + cfg.y_out]


if __name__ == "__main__":
    B, nz, num_params = 2, 32, 4
    nf, ng_layers = 8, 2
    x_out = y_out = 16
    num_channels = 1

    cfg = make_config(nz=nz, nf=nf, ng_layers=ng_layers, x_out=x_out, y_out=y_out,
                      num_params=num_params, num_channels=num_channels,
                      kernel_size=5, stride=2, padding=1)
    raw = init_raw_params(jax.random.PRNGKey(0), cfg)
    weights = prepare_kernel_weights(cfg, raw)

    kx, ky = jax.random.split(jax.random.PRNGKey(0))
    x = jax.random.normal(kx, (B, 1, nz), jnp.float32)         # latent z
    y = jax.random.normal(ky, (B, num_params), jnp.float32)    # conditioning params

    out = generator_forward(cfg, weights, x, y)
    out = jax.block_until_ready(out)
    assert out.shape == (B, num_channels, x_out, y_out), out.shape
    assert bool(jnp.all(jnp.isfinite(out)))

    ref = jax.block_until_ready(reference_forward(cfg, raw, x, y))
    max_diff = float(jnp.max(jnp.abs(out - ref)))
    assert max_diff < 3e-2, f"kernel vs reference max|diff|={max_diff}"

    print("KERNEL_OK")
</pallas_src>

<mosaic_0001>
module attributes {stable_mosaic.version = 11 : i64} {
  func.func @kernel(%arg0: memref<2x32xbf16, #tpu.memory_space<vmem>>, %arg1: memref<2x4xf32, #tpu.memory_space<vmem>>, %arg2: memref<32x256xbf16, #tpu.memory_space<vmem>>, %arg3: memref<1x256xf32, #tpu.memory_space<vmem>>, %arg4: memref<4x256xf32, #tpu.memory_space<vmem>>, %arg5: memref<1x256xf32, #tpu.memory_space<vmem>>, %arg6: memref<4x256xf32, #tpu.memory_space<vmem>>, %arg7: memref<1x256xf32, #tpu.memory_space<vmem>>, %arg8: memref<256x1024xbf16, #tpu.memory_space<vmem>>, %arg9: memref<1x1024xf32, #tpu.memory_space<vmem>>, %arg10: memref<4x8xf32, #tpu.memory_space<vmem>>, %arg11: memref<1x8xf32, #tpu.memory_space<vmem>>, %arg12: memref<4x8xf32, #tpu.memory_space<vmem>>, %arg13: memref<1x8xf32, #tpu.memory_space<vmem>>, %arg14: memref<1024x256xbf16, #tpu.memory_space<vmem>>, %arg15: memref<1x256xf32, #tpu.memory_space<vmem>>, %arg16: memref<2x256xf32, #tpu.memory_space<vmem>>, %arg17: memref<2x1024xbf16, #tpu.memory_space<vmem>>) attributes {dimension_semantics = [], scalar_prefetch = 0 : i64, scratch_operands = 1 : i64, tpu.core_type = #tpu.core_type<tc>} {
    %c0 = arith.constant 0 : index
    %c0_0 = arith.constant 0 : index
    %0 = vector.load %arg0[%c0, %c0_0] : memref<2x32xbf16, #tpu.memory_space<vmem>>, vector<2x32xbf16>
    %c0_1 = arith.constant 0 : index
    %c0_2 = arith.constant 0 : index
    %1 = vector.load %arg1[%c0_1, %c0_2] : memref<2x4xf32, #tpu.memory_space<vmem>>, vector<2x4xf32>
    %c0_3 = arith.constant 0 : index
    %c0_4 = arith.constant 0 : index
    %2 = vector.load %arg2[%c0_3, %c0_4] : memref<32x256xbf16, #tpu.memory_space<vmem>>, vector<32x256xbf16>
    %c0_5 = arith.constant 0 : index
    %c0_6 = arith.constant 0 : index
    %3 = vector.load %arg3[%c0_5, %c0_6] : memref<1x256xf32, #tpu.memory_space<vmem>>, vector<1x256xf32>
    %c0_7 = arith.constant 0 : index
    %c0_8 = arith.constant 0 : index
    %4 = vector.load %arg4[%c0_7, %c0_8] : memref<4x256xf32, #tpu.memory_space<vmem>>, vector<4x256xf32>
    %c0_9 = arith.constant 0 : index
    %c0_10 = arith.constant 0 : index
    %5 = vector.load %arg5[%c0_9, %c0_10] : memref<1x256xf32, #tpu.memory_space<vmem>>, vector<1x256xf32>
    %c0_11 = arith.constant 0 : index
    %c0_12 = arith.constant 0 : index
    %6 = vector.load %arg6[%c0_11, %c0_12] : memref<4x256xf32, #tpu.memory_space<vmem>>, vector<4x256xf32>
    %c0_13 = arith.constant 0 : index
    %c0_14 = arith.constant 0 : index
    %7 = vector.load %arg7[%c0_13, %c0_14] : memref<1x256xf32, #tpu.memory_space<vmem>>, vector<1x256xf32>
    %cst = arith.constant dense<0.000000e+00> : vector<2x256xf32>
    %8 = tpu.matmul %0, %2, %cst {dimension_numbers = #tpu.dot_dimension_numbers<[1], [0], [0], [1], [0, 0, 1, 1], [], []>} : vector<2x32xbf16>, vector<32x256xbf16>, vector<2x256xf32> -> vector<2x256xf32>
    %9 = vector.broadcast %3 : vector<1x256xf32> to vector<2x256xf32>
    %10 = arith.addf %8, %9 : vector<2x256xf32>
    %cst_15 = arith.constant dense<0.000000e+00> : vector<2xf32>
    %11 = vector.multi_reduction <add>, %10, %cst_15 [1] : vector<2x256xf32> to vector<2xf32>
    %12 = vector.shape_cast %11 : vector<2xf32> to vector<2x1xf32>
    %cst_16 = arith.constant 2.560000e+02 : f32
    %13 = vector.broadcast %cst_16 : f32 to vector<2x1xf32>
    %14 = arith.divf %12, %13 : vector<2x1xf32>
    %15 = vector.broadcast %14 : vector<2x1xf32> to vector<2x256xf32>
    %16 = arith.subf %10, %15 : vector<2x256xf32>
    %17 = arith.mulf %16, %16 : vector<2x256xf32>
    %cst_17 = arith.constant dense<0.000000e+00> : vector<2xf32>
    %18 = vector.multi_reduction <add>, %17, %cst_17 [1] : vector<2x256xf32> to vector<2xf32>
    %19 = vector.shape_cast %18 : vector<2xf32> to vector<2x1xf32>
    %cst_18 = arith.constant 2.560000e+02 : f32
    %20 = vector.broadcast %cst_18 : f32 to vector<2x1xf32>
    %21 = arith.divf %19, %20 : vector<2x1xf32>
    %22 = vector.broadcast %14 : vector<2x1xf32> to vector<2x256xf32>
    %23 = arith.subf %10, %22 : vector<2x256xf32>
    %cst_19 = arith.constant 9.99999974E-6 : f32
    %24 = vector.broadcast %cst_19 : f32 to vector<2x1xf32>
    %25 = arith.addf %21, %24 : vector<2x1xf32>
    %26 = math.rsqrt %25 : vector<2x1xf32>
    %27 = vector.broadcast %26 : vector<2x1xf32> to vector<2x256xf32>
    %28 = arith.mulf %23, %27 : vector<2x256xf32>
    %29 = vector.extract_strided_slice %1 {offsets = [0, 0], sizes = [2, 1], strides = [1, 1]} : vector<2x4xf32> to vector<2x1xf32>
    %30 = vector.extract_strided_slice %4 {offsets = [0, 0], sizes = [1, 256], strides = [1, 1]} : vector<4x256xf32> to vector<1x256xf32>
    %31 = vector.broadcast %29 : vector<2x1xf32> to vector<2x256xf32>
    %32 = vector.broadcast %30 : vector<1x256xf32> to vector<2x256xf32>
    %33 = arith.mulf %31, %32 : vector<2x256xf32>
    %34 = vector.broadcast %5 : vector<1x256xf32> to vector<2x256xf32>
    %35 = arith.addf %34, %33 : vector<2x256xf32>
    %36 = vector.extract_strided_slice %1 {offsets = [0, 0], sizes = [2, 1], strides = [1, 1]} : vector<2x4xf32> to vector<2x1xf32>
    %37 = vector.extract_strided_slice %6 {offsets = [0, 0], sizes = [1, 256], strides = [1, 1]} : vector<4x256xf32> to vector<1x256xf32>
    %38 = vector.broadcast %36 : vector<2x1xf32> to vector<2x256xf32>
    %39 = vector.broadcast %37 : vector<1x256xf32> to vector<2x256xf32>
    %40 = arith.mulf %38, %39 : vector<2x256xf32>
    %41 = vector.broadcast %7 : vector<1x256xf32> to vector<2x256xf32>
    %42 = arith.addf %41, %40 : vector<2x256xf32>
    %43 = vector.extract_strided_slice %1 {offsets = [0, 1], sizes = [2, 1], strides = [1, 1]} : vector<2x4xf32> to vector<2x1xf32>
    %44 = vector.extract_strided_slice %4 {offsets = [1, 0], sizes = [1, 256], strides = [1, 1]} : vector<4x256xf32> to vector<1x256xf32>
    %45 = vector.broadcast %43 : vector<2x1xf32> to vector<2x256xf32>
    %46 = vector.broadcast %44 : vector<1x256xf32> to vector<2x256xf32>
    %47 = arith.mulf %45, %46 : vector<2x256xf32>
    %48 = arith.addf %35, %47 : vector<2x256xf32>
    %49 = vector.extract_strided_slice %1 {offsets = [0, 1], sizes = [2, 1], strides = [1, 1]} : vector<2x4xf32> to vector<2x1xf32>
    %50 = vector.extract_strided_slice %6 {offsets = [1, 0], sizes = [1, 256], strides = [1, 1]} : vector<4x256xf32> to vector<1x256xf32>
    %51 = vector.broadcast %49 : vector<2x1xf32> to vector<2x256xf32>
    %52 = vector.broadcast %50 : vector<1x256xf32> to vector<2x256xf32>
    %53 = arith.mulf %51, %52 : vector<2x256xf32>
    %54 = arith.addf %42, %53 : vector<2x256xf32>
    %55 = vector.extract_strided_slice %1 {offsets = [0, 2], sizes = [2, 1], strides = [1, 1]} : vector<2x4xf32> to vector<2x1xf32>
    %56 = vector.extract_strided_slice %4 {offsets = [2, 0], sizes = [1, 256], strides = [1, 1]} : vector<4x256xf32> to vector<1x256xf32>
    %57 = vector.broadcast %55 : vector<2x1xf32> to vector<2x256xf32>
    %58 = vector.broadcast %56 : vector<1x256xf32> to vector<2x256xf32>
    %59 = arith.mulf %57, %58 : vector<2x256xf32>
    %60 = arith.addf %48, %59 : vector<2x256xf32>
    %61 = vector.extract_strided_slice %1 {offsets = [0, 2], sizes = [2, 1], strides = [1, 1]} : vector<2x4xf32> to vector<2x1xf32>
    %62 = vector.extract_strided_slice %6 {offsets = [2, 0], sizes = [1, 256], strides = [1, 1]} : vector<4x256xf32> to vector<1x256xf32>
    %63 = vector.broadcast %61 : vector<2x1xf32> to vector<2x256xf32>
    %64 = vector.broadcast %62 : vector<1x256xf32> to vector<2x256xf32>
    %65 = arith.mulf %63, %64 : vector<2x256xf32>
    %66 = arith.addf %54, %65 : vector<2x256xf32>
    %67 = vector.extract_strided_slice %1 {offsets = [0, 3], sizes = [2, 1], strides = [1, 1]} : vector<2x4xf32> to vector<2x1xf32>
    %68 = vector.extract_strided_slice %4 {offsets = [3, 0], sizes = [1, 256], strides = [1, 1]} : vector<4x256xf32> to vector<1x256xf32>
    %69 = vector.broadcast %67 : vector<2x1xf32> to vector<2x256xf32>
    %70 = vector.broadcast %68 : vector<1x256xf32> to vector<2x256xf32>
    %71 = arith.mulf %69, %70 : vector<2x256xf32>
    %72 = arith.addf %60, %71 : vector<2x256xf32>
    %73 = vector.extract_strided_slice %1 {offsets = [0, 3], sizes = [2, 1], strides = [1, 1]} : vector<2x4xf32> to vector<2x1xf32>
    %74 = vector.extract_strided_slice %6 {offsets = [3, 0], sizes = [1, 256], strides = [1, 1]} : vector<4x256xf32> to vector<1x256xf32>
    %75 = vector.broadcast %73 : vector<2x1xf32> to vector<2x256xf32>
    %76 = vector.broadcast %74 : vector<1x256xf32> to vector<2x256xf32>
    %77 = arith.mulf %75, %76 : vector<2x256xf32>
    %78 = arith.addf %66, %77 : vector<2x256xf32>
    %79 = arith.mulf %72, %28 : vector<2x256xf32>
    %80 = arith.addf %79, %78 : vector<2x256xf32>
    %cst_20 = arith.constant 0.000000e+00 : f32
    %81 = vector.broadcast %cst_20 : f32 to vector<2x256xf32>
    %82 = arith.maximumf %80, %81 : vector<2x256xf32>
    %83 = arith.truncf %82 : vector<2x256xf32> to vector<2x256xbf16>
    %c0_21 = arith.constant 0 : index
    %c0_22 = arith.constant 0 : index
    %84 = vector.load %arg8[%c0_21, %c0_22] : memref<256x1024xbf16, #tpu.memory_space<vmem>>, vector<256x1024xbf16>
    %c0_23 = arith.constant 0 : index
    %c0_24 = arith.constant 0 : index
    %85 = vector.load %arg9[%c0_23, %c0_24] : memref<1x1024xf32, #tpu.memory_space<vmem>>, vector<1x1024xf32>
    %cst_25 = arith.constant dense<0.000000e+00> : vector<2x1024xf32>
    %86 = tpu.matmul %83, %84, %cst_25 {dimension_numbers = #tpu.dot_dimension_numbers<[1], [0], [0], [1], [0, 0, 1, 1], [], []>} : vector<2x256xbf16>, vector<256x1024xbf16>, vector<2x1024xf32> -> vector<2x1024xf32>
    %87 = vector.broadcast %85 : vector<1x1024xf32> to vector<2x1024xf32>
    %88 = arith.addf %86, %87 : vector<2x1024xf32>
    %c0_26 = arith.constant 0 : index
    %c0_27 = arith.constant 0 : index
    %89 = vector.load %arg10[%c0_26, %c0_27] : memref<4x8xf32, #tpu.memory_space<vmem>>, vector<4x8xf32>
    %c0_28 = arith.constant 0 : index
    %c0_29 = arith.constant 0 : index
    %90 = vector.load %arg11[%c0_28, %c0_29] : memref<1x8xf32, #tpu.memory_space<vmem>>, vector<1x8xf32>
    %c0_30 = arith.constant 0 : index
    %c0_31 = arith.constant 0 : index
    %91 = vector.load %arg12[%c0_30, %c0_31] : memref<4x8xf32, #tpu.memory_space<vmem>>, vector<4x8xf32>
    %c0_32 = arith.constant 0 : index
    %c0_33 = arith.constant 0 : index
    %92 = vector.load %arg13[%c0_32, %c0_33] : memref<1x8xf32, #tpu.memory_space<vmem>>, vector<1x8xf32>
    %93 = vector.extract_strided_slice %1 {offsets = [0, 0], sizes = [2, 1], strides = [1, 1]} : vector<2x4xf32> to vector<2x1xf32>
    %94 = vector.extract_strided_slice %89 {offsets = [0, 0], sizes = [1, 8], strides = [1, 1]} : vector<4x8xf32> to vector<1x8xf32>
    %95 = vector.broadcast %93 : vector<2x1xf32> to vector<2x8xf32>
    %96 = vector.broadcast %94 : vector<1x8xf32> to vector<2x8xf32>
    %97 = arith.mulf %95, %96 : vector<2x8xf32>
    %98 = vector.broadcast %90 : vector<1x8xf32> to vector<2x8xf32>
    %99 = arith.addf %98, %97 : vector<2x8xf32>
    %100 = vector.extract_strided_slice %1 {offsets = [0, 0], sizes = [2, 1], strides = [1, 1]} : vector<2x4xf32> to vector<2x1xf32>
    %101 = vector.extract_strided_slice %91 {offsets = [0, 0], sizes = [1, 8], strides = [1, 1]} : vector<4x8xf32> to vector<1x8xf32>
    %102 = vector.broadcast %100 : vector<2x1xf32> to vector<2x8xf32>
    %103 = vector.broadcast %101 : vector<1x8xf32> to vector<2x8xf32>
    %104 = arith.mulf %102, %103 : vector<2x8xf32>
    %105 = vector.broadcast %92 : vector<1x8xf32> to vector<2x8xf32>
    %106 = arith.addf %105, %104 : vector<2x8xf32>
    %107 = vector.extract_strided_slice %1 {offsets = [0, 1], sizes = [2, 1], strides = [1, 1]} : vector<2x4xf32> to vector<2x1xf32>
    %108 = vector.extract_strided_slice %89 {offsets = [1, 0], sizes = [1, 8], strides = [1, 1]} : vector<4x8xf32> to vector<1x8xf32>
    %109 = vector.broadcast %107 : vector<2x1xf32> to vector<2x8xf32>
    %110 = vector.broadcast %108 : vector<1x8xf32> to vector<2x8xf32>
    %111 = arith.mulf %109, %110 : vector<2x8xf32>
    %112 = arith.addf %99, %111 : vector<2x8xf32>
    %113 = vector.extract_strided_slice %1 {offsets = [0, 1], sizes = [2, 1], strides = [1, 1]} : vector<2x4xf32> to vector<2x1xf32>
    %114 = vector.extract_strided_slice %91 {offsets = [1, 0], sizes = [1, 8], strides = [1, 1]} : vector<4x8xf32> to vector<1x8xf32>
    %115 = vector.broadcast %113 : vector<2x1xf32> to vector<2x8xf32>
    %116 = vector.broadcast %114 : vector<1x8xf32> to vector<2x8xf32>
    %117 = arith.mulf %115, %116 : vector<2x8xf32>
    %118 = arith.addf %106, %117 : vector<2x8xf32>
    %119 = vector.extract_strided_slice %1 {offsets = [0, 2], sizes = [2, 1], strides = [1, 1]} : vector<2x4xf32> to vector<2x1xf32>
    %120 = vector.extract_strided_slice %89 {offsets = [2, 0], sizes = [1, 8], strides = [1, 1]} : vector<4x8xf32> to vector<1x8xf32>
    %121 = vector.broadcast %119 : vector<2x1xf32> to vector<2x8xf32>
    %122 = vector.broadcast %120 : vector<1x8xf32> to vector<2x8xf32>
    %123 = arith.mulf %121, %122 : vector<2x8xf32>
    %124 = arith.addf %112, %123 : vector<2x8xf32>
    %125 = vector.extract_strided_slice %1 {offsets = [0, 2], sizes = [2, 1], strides = [1, 1]} : vector<2x4xf32> to vector<2x1xf32>
    %126 = vector.extract_strided_slice %91 {offsets = [2, 0], sizes = [1, 8], strides = [1, 1]} : vector<4x8xf32> to vector<1x8xf32>
    %127 = vector.broadcast %125 : vector<2x1xf32> to vector<2x8xf32>
    %128 = vector.broadcast %126 : vector<1x8xf32> to vector<2x8xf32>
    %129 = arith.mulf %127, %128 : vector<2x8xf32>
    %130 = arith.addf %118, %129 : vector<2x8xf32>
    %131 = vector.extract_strided_slice %1 {offsets = [0, 3], sizes = [2, 1], strides = [1, 1]} : vector<2x4xf32> to vector<2x1xf32>
    %132 = vector.extract_strided_slice %89 {offsets = [3, 0], sizes = [1, 8], strides = [1, 1]} : vector<4x8xf32> to vector<1x8xf32>
    %133 = vector.broadcast %131 : vector<2x1xf32> to vector<2x8xf32>
    %134 = vector.broadcast %132 : vector<1x8xf32> to vector<2x8xf32>
    %135 = arith.mulf %133, %134 : vector<2x8xf32>
    %136 = arith.addf %124, %135 : vector<2x8xf32>
    %137 = vector.extract_strided_slice %1 {offsets = [0, 3], sizes = [2, 1], strides = [1, 1]} : vector<2x4xf32> to vector<2x1xf32>
    %138 = vector.extract_strided_slice %91 {offsets = [3, 0], sizes = [1, 8], strides = [1, 1]} : vector<4x8xf32> to vector<1x8xf32>
    %139 = vector.broadcast %137 : vector<2x1xf32> to vector<2x8xf32>
    %140 = vector.broadcast %138 : vector<1x8xf32> to vector<2x8xf32>
    %141 = arith.mulf %139, %140 : vector<2x8xf32>
    %142 = arith.addf %130, %141 : vector<2x8xf32>
    %143 = tpu.iota {dimensions = array<i32: 1>} : vector<1x128xi32>
    %c81_i32 = arith.constant 81 : i32
    %144 = vector.broadcast %c81_i32 : i32 to vector<1x128xi32>
    %145 = arith.cmpi slt, %143, %144 : vector<1x128xi32>
    %146 = arith.extui %145 : vector<1x128xi1> to vector<1x128xi32>
    %147 = arith.sitofp %146 : vector<1x128xi32> to vector<1x128xf32>
    %148 = vector.extract_strided_slice %88 {offsets = [0, 0], sizes = [2, 128], strides = [1, 1]} : vector<2x1024xf32> to vector<2x128xf32>
    %149 = vector.broadcast %147 : vector<1x128xf32> to vector<2x128xf32>
    %150 = arith.mulf %148, %149 : vector<2x128xf32>
    %cst_34 = arith.constant dense<0.000000e+00> : vector<2xf32>
    %151 = vector.multi_reduction <add>, %150, %cst_34 [1] : vector<2x128xf32> to vector<2xf32>
    %152 = vector.shape_cast %151 : vector<2xf32> to vector<2x1xf32>
    %cst_35 = arith.constant 0.0123456791 : f32
    %153 = vector.broadcast %cst_35 : f32 to vector<2x1xf32>
    %154 = arith.mulf %152, %153 : vector<2x1xf32>
    %155 = vector.broadcast %154 : vector<2x1xf32> to vector<2x128xf32>
    %156 = arith.subf %148, %155 : vector<2x128xf32>
    %157 = vector.broadcast %147 : vector<1x128xf32> to vector<2x128xf32>
    %158 = arith.mulf %156, %157 : vector<2x128xf32>
    %159 = arith.mulf %158, %158 : vector<2x128xf32>
    %cst_36 = arith.constant dense<0.000000e+00> : vector<2xf32>
    %160 = vector.multi_reduction <add>, %159, %cst_36 [1] : vector<2x128xf32> to vector<2xf32>
    %161 = vector.shape_cast %160 : vector<2xf32> to vector<2x1xf32>
    %cst_37 = arith.constant 0.0123456791 : f32
    %162 = vector.broadcast %cst_37 : f32 to vector<2x1xf32>
    %163 = arith.mulf %161, %162 : vector<2x1xf32>
    %cst_38 = arith.constant 9.99999974E-6 : f32
    %164 = vector.broadcast %cst_38 : f32 to vector<2x1xf32>
    %165 = arith.addf %163, %164 : vector<2x1xf32>
    %166 = math.rsqrt %165 : vector<2x1xf32>
    %167 = vector.broadcast %166 : vector<2x1xf32> to vector<2x128xf32>
    %168 = arith.mulf %158, %167 : vector<2x128xf32>
    %169 = vector.extract_strided_slice %136 {offsets = [0, 0], sizes = [2, 1], strides = [1, 1]} : vector<2x8xf32> to vector<2x1xf32>
    %170 = vector.broadcast %169 : vector<2x1xf32> to vector<2x128xf32>
    %171 = arith.mulf %170, %168 : vector<2x128xf32>
    %172 = vector.extract_strided_slice %142 {offsets = [0, 0], sizes = [2, 1], strides = [1, 1]} : vector<2x8xf32> to vector<2x1xf32>
    %173 = vector.broadcast %172 : vector<2x1xf32> to vector<2x128xf32>
    %174 = arith.addf %171, %173 : vector<2x128xf32>
    %cst_39 = arith.constant 0.000000e+00 : f32
    %175 = vector.broadcast %cst_39 : f32 to vector<2x128xf32>
    %176 = arith.maximumf %174, %175 : vector<2x128xf32>
    %177 = vector.broadcast %147 : vector<1x128xf32> to vector<2x128xf32>
    %178 = arith.mulf %176, %177 : vector<2x128xf32>
    %179 = arith.truncf %178 : vector<2x128xf32> to vector<2x128xbf16>
    %c0_40 = arith.constant 0 : index
    %c0_41 = arith.constant 0 : index
    %180 = vector.load %arg17[%c0_40, %c0_41] : memref<2x1024xbf16, #tpu.memory_space<vmem>>, vector<2x128xbf16>
    tpu.vector_store %arg17[%c0_40, %c0_41], %179 {strides = array<i32>} : memref<2x1024xbf16, #tpu.memory_space<vmem>>, vector<2x128xbf16>,
    %181 = vector.extract_strided_slice %88 {offsets = [0, 128], sizes = [2, 128], strides = [1, 1]} : vector<2x1024xf32> to vector<2x128xf32>
    %182 = vector.broadcast %147 : vector<1x128xf32> to vector<2x128xf32>
    %183 = arith.mulf %181, %182 : vector<2x128xf32>
    %cst_42 = arith.constant dense<0.000000e+00> : vector<2xf32>
    %184 = vector.multi_reduction <add>, %183, %cst_42 [1] : vector<2x128xf32> to vector<2xf32>
    %185 = vector.shape_cast %184 : vector<2xf32> to vector<2x1xf32>
    %cst_43 = arith.constant 0.0123456791 : f32
    %186 = vector.broadcast %cst_43 : f32 to vector<2x1xf32>
    %187 = arith.mulf %185, %186 : vector<2x1xf32>
    %188 = vector.broadcast %187 : vector<2x1xf32> to vector<2x128xf32>
    %189 = arith.subf %181, %188 : vector<2x128xf32>
    %190 = vector.broadcast %147 : vector<1x128xf32> to vector<2x128xf32>
    %191 = arith.mulf %189, %190 : vector<2x128xf32>
    %192 = arith.mulf %191, %191 : vector<2x128xf32>
    %cst_44 = arith.constant dense<0.000000e+00> : vector<2xf32>
    %193 = vector.multi_reduction <add>, %192, %cst_44 [1] : vector<2x128xf32> to vector<2xf32>
    %194 = vector.shape_cast %193 : vector<2xf32> to vector<2x1xf32>
    %cst_45 = arith.constant 0.0123456791 : f32
    %195 = vector.broadcast %cst_45 : f32 to vector<2x1xf32>
    %196 = arith.mulf %194, %195 : vector<2x1xf32>
    %cst_46 = arith.constant 9.99999974E-6 : f32
    %197 = vector.broadcast %cst_46 : f32 to vector<2x1xf32>
    %198 = arith.addf %196, %197 : vector<2x1xf32>
    %199 = math.rsqrt %198 : vector<2x1xf32>
    %200 = vector.broadcast %199 : vector<2x1xf32> to vector<2x128xf32>
    %201 = arith.mulf %191, %200 : vector<2x128xf32>
    %202 = vector.extract_strided_slice %136 {offsets = [0, 1], sizes = [2, 1], strides = [1, 1]} : vector<2x8xf32> to vector<2x1xf32>
    %203 = vector.broadcast %202 : vector<2x1xf32> to vector<2x128xf32>
    %204 = arith.mulf %203, %201 : vector<2x128xf32>
    %205 = vector.extract_strided_slice %142 {offsets = [0, 1], sizes = [2, 1], strides = [1, 1]} : vector<2x8xf32> to vector<2x1xf32>
    %206 = vector.broadcast %205 : vector<2x1xf32> to vector<2x128xf32>
    %207 = arith.addf %204, %206 : vector<2x128xf32>
    %cst_47 = arith.constant 0.000000e+00 : f32
    %208 = vector.broadcast %cst_47 : f32 to vector<2x128xf32>
    %209 = arith.maximumf %207, %208 : vector<2x128xf32>
    %210 = vector.broadcast %147 : vector<1x128xf32> to vector<2x128xf32>
    %211 = arith.mulf %209, %210 : vector<2x128xf32>
    %212 = arith.truncf %211 : vector<2x128xf32> to vector<2x128xbf16>
    %c0_48 = arith.constant 0 : index
    %c128 = arith.constant 128 : index
    %213 = vector.load %arg17[%c0_48, %c128] : memref<2x1024xbf16, #tpu.memory_space<vmem>>, vector<2x128xbf16>
    tpu.vector_store %arg17[%c0_48, %c128], %212 {strides = array<i32>} : memref<2x1024xbf16, #tpu.memory_space<vmem>>, vector<2x128xbf16>,
    %214 = vector.extract_strided_slice %88 {offsets = [0, 256], sizes = [2, 128], strides = [1, 1]} : vector<2x1024xf32> to vector<2x128xf32>
    %215 = vector.broadcast %147 : vector<1x128xf32> to vector<2x128xf32>
    %216 = arith.mulf %214, %215 : vector<2x128xf32>
    %cst_49 = arith.constant dense<0.000000e+00> : vector<2xf32>
    %217 = vector.multi_reduction <add>, %216, %cst_49 [1] : vector<2x128xf32> to vector<2xf32>
    %218 = vector.shape_cast %217 : vector<2xf32> to vector<2x1xf32>
    %cst_50 = arith.constant 0.0123456791 : f32
    %219 = vector.broadcast %cst_50 : f32 to vector<2x1xf32>
    %220 = arith.mulf %218, %219 : vector<2x1xf32>
    %221 = vector.broadcast %220 : vector<2x1xf32> to vector<2x128xf32>
    %222 = arith.subf %214, %221 : vector<2x128xf32>
    %223 = vector.broadcast %147 : vector<1x128xf32> to vector<2x128xf32>
    %224 = arith.mulf %222, %223 : vector<2x128xf32>
    %225 = arith.mulf %224, %224 : vector<2x128xf32>
    %cst_51 = arith.constant dense<0.000000e+00> : vector<2xf32>
    %226 = vector.multi_reduction <add>, %225, %cst_51 [1] : vector<2x128xf32> to vector<2xf32>
    %227 = vector.shape_cast %226 : vector<2xf32> to vector<2x1xf32>
    %cst_52 = arith.constant 0.0123456791 : f32
    %228 = vector.broadcast %cst_52 : f32 to vector<2x1xf32>
    %229 = arith.mulf %227, %228 : vector<2x1xf32>
    %cst_53 = arith.constant 9.99999974E-6 : f32
    %230 = vector.broadcast %cst_53 : f32 to vector<2x1xf32>
    %231 = arith.addf %229, %230 : vector<2x1xf32>
    %232 = math.rsqrt %231 : vector<2x1xf32>
    %233 = vector.broadcast %232 : vector<2x1xf32> to vector<2x128xf32>
    %234 = arith.mulf %224, %233 : vector<2x128xf32>
    %235 = vector.extract_strided_slice %136 {offsets = [0, 2], sizes = [2, 1], strides = [1, 1]} : vector<2x8xf32> to vector<2x1xf32>
    %236 = vector.broadcast %235 : vector<2x1xf32> to vector<2x128xf32>
    %237 = arith.mulf %236, %234 : vector<2x128xf32>
    %238 = vector.extract_strided_slice %142 {offsets = [0, 2], sizes = [2, 1], strides = [1, 1]} : vector<2x8xf32> to vector<2x1xf32>
    %239 = vector.broadcast %238 : vector<2x1xf32> to vector<2x128xf32>
    %240 = arith.addf %237, %239 : vector<2x128xf32>
    %cst_54 = arith.constant 0.000000e+00 : f32
    %241 = vector.broadcast %cst_54 : f32 to vector<2x128xf32>
    %242 = arith.maximumf %240, %241 : vector<2x128xf32>
    %243 = vector.broadcast %147 : vector<1x128xf32> to vector<2x128xf32>
    %244 = arith.mulf %242, %243 : vector<2x128xf32>
    %245 = arith.truncf %244 : vector<2x128xf32> to vector<2x128xbf16>
    %c0_55 = arith.constant 0 : index
    %c256 = arith.constant 256 : index
    %246 = vector.load %arg17[%c0_55, %c256] : memref<2x1024xbf16, #tpu.memory_space<vmem>>, vector<2x128xbf16>
    tpu.vector_store %arg17[%c0_55, %c256], %245 {strides = array<i32>} : memref<2x1024xbf16, #tpu.memory_space<vmem>>, vector<2x128xbf16>,
    %247 = vector.extract_strided_slice %88 {offsets = [0, 384], sizes = [2, 128], strides = [1, 1]} : vector<2x1024xf32> to vector<2x128xf32>
    %248 = vector.broadcast %147 : vector<1x128xf32> to vector<2x128xf32>
    %249 = arith.mulf %247, %248 : vector<2x128xf32>
    %cst_56 = arith.constant dense<0.000000e+00> : vector<2xf32>
    %250 = vector.multi_reduction <add>, %249, %cst_56 [1] : vector<2x128xf32> to vector<2xf32>
    %251 = vector.shape_cast %250 : vector<2xf32> to vector<2x1xf32>
    %cst_57 = arith.constant 0.0123456791 : f32
    %252 = vector.broadcast %cst_57 : f32 to vector<2x1xf32>
    %253 = arith.mulf %251, %252 : vector<2x1xf32>
    %254 = vector.broadcast %253 : vector<2x1xf32> to vector<2x128xf32>
    %255 = arith.subf %247, %254 : vector<2x128xf32>
    %256 = vector.broadcast %147 : vector<1x128xf32> to vector<2x128xf32>
    %257 = arith.mulf %255, %256 : vector<2x128xf32>
    %258 = arith.mulf %257, %257 : vector<2x128xf32>
    %cst_58 = arith.constant dense<0.000000e+00> : vector<2xf32>
    %259 = vector.multi_reduction <add>, %258, %cst_58 [1] : vector<2x128xf32> to vector<2xf32>
    %260 = vector.shape_cast %259 : vector<2xf32> to vector<2x1xf32>
    %cst_59 = arith.constant 0.0123456791 : f32
    %261 = vector.broadcast %cst_59 : f32 to vector<2x1xf32>
    %262 = arith.mulf %260, %261 : vector<2x1xf32>
    %cst_60 = arith.constant 9.99999974E-6 : f32
    %263 = vector.broadcast %cst_60 : f32 to vector<2x1xf32>
    %264 = arith.addf %262, %263 : vector<2x1xf32>
    %265 = math.rsqrt %264 : vector<2x1xf32>
    %266 = vector.broadcast %265 : vector<2x1xf32> to vector<2x128xf32>
    %267 = arith.mulf %257, %266 : vector<2x128xf32>
    %268 = vector.extract_strided_slice %136 {offsets = [0, 3], sizes = [2, 1], strides = [1, 1]} : vector<2x8xf32> to vector<2x1xf32>
    %269 = vector.broadcast %268 : vector<2x1xf32> to vector<2x128xf32>
    %270 = arith.mulf %269, %267 : vector<2x128xf32>
    %271 = vector.extract_strided_slice %142 {offsets = [0, 3], sizes = [2, 1], strides = [1, 1]} : vector<2x8xf32> to vector<2x1xf32>
    %272 = vector.broadcast %271 : vector<2x1xf32> to vector<2x128xf32>
    %273 = arith.addf %270, %272 : vector<2x128xf32>
    %cst_61 = arith.constant 0.000000e+00 : f32
    %274 = vector.broadcast %cst_61 : f32 to vector<2x128xf32>
    %275 = arith.maximumf %273, %274 : vector<2x128xf32>
    %276 = vector.broadcast %147 : vector<1x128xf32> to vector<2x128xf32>
    %277 = arith.mulf %275, %276 : vector<2x128xf32>
    %278 = arith.truncf %277 : vector<2x128xf32> to vector<2x128xbf16>
    %c0_62 = arith.constant 0 : index
    %c384 = arith.constant 384 : index
    %279 = vector.load %arg17[%c0_62, %c384] : memref<2x1024xbf16, #tpu.memory_space<vmem>>, vector<2x128xbf16>
    tpu.vector_store %arg17[%c0_62, %c384], %278 {strides = array<i32>} : memref<2x1024xbf16, #tpu.memory_space<vmem>>, vector<2x128xbf16>,
    %280 = vector.extract_strided_slice %88 {offsets = [0, 512], sizes = [2, 128], strides = [1, 1]} : vector<2x1024xf32> to vector<2x128xf32>
    %281 = vector.broadcast %147 : vector<1x128xf32> to vector<2x128xf32>
    %282 = arith.mulf %280, %281 : vector<2x128xf32>
    %cst_63 = arith.constant dense<0.000000e+00> : vector<2xf32>
    %283 = vector.multi_reduction <add>, %282, %cst_63 [1] : vector<2x128xf32> to vector<2xf32>
    %284 = vector.shape_cast %283 : vector<2xf32> to vector<2x1xf32>
    %cst_64 = arith.constant 0.0123456791 : f32
    %285 = vector.broadcast %cst_64 : f32 to vector<2x1xf32>
    %286 = arith.mulf %284, %285 : vector<2x1xf32>
    %287 = vector.broadcast %286 : vector<2x1xf32> to vector<2x128xf32>
    %288 = arith.subf %280, %287 : vector<2x128xf32>
    %289 = vector.broadcast %147 : vector<1x128xf32> to vector<2x128xf32>
    %290 = arith.mulf %288, %289 : vector<2x128xf32>
    %291 = arith.mulf %290, %290 : vector<2x128xf32>
    %cst_65 = arith.constant dense<0.000000e+00> : vector<2xf32>
    %292 = vector.multi_reduction <add>, %291, %cst_65 [1] : vector<2x128xf32> to vector<2xf32>
    %293 = vector.shape_cast %292 : vector<2xf32> to vector<2x1xf32>
    %cst_66 = arith.constant 0.0123456791 : f32
    %294 = vector.broadcast %cst_66 : f32 to vector<2x1xf32>
    %295 = arith.mulf %293, %294 : vector<2x1xf32>
    %cst_67 = arith.constant 9.99999974E-6 : f32
    %296 = vector.broadcast %cst_67 : f32 to vector<2x1xf32>
    %297 = arith.addf %295, %296 : vector<2x1xf32>
    %298 = math.rsqrt %297 : vector<2x1xf32>
    %299 = vector.broadcast %298 : vector<2x1xf32> to vector<2x128xf32>
    %300 = arith.mulf %290, %299 : vector<2x128xf32>
    %301 = vector.extract_strided_slice %136 {offsets = [0, 4], sizes = [2, 1], strides = [1, 1]} : vector<2x8xf32> to vector<2x1xf32>
    %302 = vector.broadcast %301 : vector<2x1xf32> to vector<2x128xf32>
    %303 = arith.mulf %302, %300 : vector<2x128xf32>
    %304 = vector.extract_strided_slice %142 {offsets = [0, 4], sizes = [2, 1], strides = [1, 1]} : vector<2x8xf32> to vector<2x1xf32>
    %305 = vector.broadcast %304 : vector<2x1xf32> to vector<2x128xf32>
    %306 = arith.addf %303, %305 : vector<2x128xf32>
    %cst_68 = arith.constant 0.000000e+00 : f32
    %307 = vector.broadcast %cst_68 : f32 to vector<2x128xf32>
    %308 = arith.maximumf %306, %307 : vector<2x128xf32>
    %309 = vector.broadcast %147 : vector<1x128xf32> to vector<2x128xf32>
    %310 = arith.mulf %308, %309 : vector<2x128xf32>
    %311 = arith.truncf %310 : vector<2x128xf32> to vector<2x128xbf16>
    %c0_69 = arith.constant 0 : index
    %c512 = arith.constant 512 : index
    %312 = vector.load %arg17[%c0_69, %c512] : memref<2x1024xbf16, #tpu.memory_space<vmem>>, vector<2x128xbf16>
    tpu.vector_store %arg17[%c0_69, %c512], %311 {strides = array<i32>} : memref<2x1024xbf16, #tpu.memory_space<vmem>>, vector<2x128xbf16>,
    %313 = vector.extract_strided_slice %88 {offsets = [0, 640], sizes = [2, 128], strides = [1, 1]} : vector<2x1024xf32> to vector<2x128xf32>
    %314 = vector.broadcast %147 : vector<1x128xf32> to vector<2x128xf32>
    %315 = arith.mulf %313, %314 : vector<2x128xf32>
    %cst_70 = arith.constant dense<0.000000e+00> : vector<2xf32>
    %316 = vector.multi_reduction <add>, %315, %cst_70 [1] : vector<2x128xf32> to vector<2xf32>
    %317 = vector.shape_cast %316 : vector<2xf32> to vector<2x1xf32>
    %cst_71 = arith.constant 0.0123456791 : f32
    %318 = vector.broadcast %cst_71 : f32 to vector<2x1xf32>
    %319 = arith.mulf %317, %318 : vector<2x1xf32>
    %320 = vector.broadcast %319 : vector<2x1xf32> to vector<2x128xf32>
    %321 = arith.subf %313, %320 : vector<2x128xf32>
    %322 = vector.broadcast %147 : vector<1x128xf32> to vector<2x128xf32>
    %323 = arith.mulf %321, %322 : vector<2x128xf32>
    %324 = arith.mulf %323, %323 : vector<2x128xf32>
    %cst_72 = arith.constant dense<0.000000e+00> : vector<2xf32>
    %325 = vector.multi_reduction <add>, %324, %cst_72 [1] : vector<2x128xf32> to vector<2xf32>
    %326 = vector.shape_cast %325 : vector<2xf32> to vector<2x1xf32>
    %cst_73 = arith.constant 0.0123456791 : f32
    %327 = vector.broadcast %cst_73 : f32 to vector<2x1xf32>
    %328 = arith.mulf %326, %327 : vector<2x1xf32>
    %cst_74 = arith.constant 9.99999974E-6 : f32
    %329 = vector.broadcast %cst_74 : f32 to vector<2x1xf32>
    %330 = arith.addf %328, %329 : vector<2x1xf32>
    %331 = math.rsqrt %330 : vector<2x1xf32>
    %332 = vector.broadcast %331 : vector<2x1xf32> to vector<2x128xf32>
    %333 = arith.mulf %323, %332 : vector<2x128xf32>
    %334 = vector.extract_strided_slice %136 {offsets = [0, 5], sizes = [2, 1], strides = [1, 1]} : vector<2x8xf32> to vector<2x1xf32>
    %335 = vector.broadcast %334 : vector<2x1xf32> to vector<2x128xf32>
    %336 = arith.mulf %335, %333 : vector<2x128xf32>
    %337 = vector.extract_strided_slice %142 {offsets = [0, 5], sizes = [2, 1], strides = [1, 1]} : vector<2x8xf32> to vector<2x1xf32>
    %338 = vector.broadcast %337 : vector<2x1xf32> to vector<2x128xf32>
    %339 = arith.addf %336, %338 : vector<2x128xf32>
    %cst_75 = arith.constant 0.000000e+00 : f32
    %340 = vector.broadcast %cst_75 : f32 to vector<2x128xf32>
    %341 = arith.maximumf %339, %340 : vector<2x128xf32>
    %342 = vector.broadcast %147 : vector<1x128xf32> to vector<2x128xf32>
    %343 = arith.mulf %341, %342 : vector<2x128xf32>
    %344 = arith.truncf %343 : vector<2x128xf32> to vector<2x128xbf16>
    %c0_76 = arith.constant 0 : index
    %c640 = arith.constant 640 : index
    %345 = vector.load %arg17[%c0_76, %c640] : memref<2x1024xbf16, #tpu.memory_space<vmem>>, vector<2x128xbf16>
    tpu.vector_store %arg17[%c0_76, %c640], %344 {strides = array<i32>} : memref<2x1024xbf16, #tpu.memory_space<vmem>>, vector<2x128xbf16>,
    %346 = vector.extract_strided_slice %88 {offsets = [0, 768], sizes = [2, 128], strides = [1, 1]} : vector<2x1024xf32> to vector<2x128xf32>
    %347 = vector.broadcast %147 : vector<1x128xf32> to vector<2x128xf32>
    %348 = arith.mulf %346, %347 : vector<2x128xf32>
    %cst_77 = arith.constant dense<0.000000e+00> : vector<2xf32>
    %349 = vector.multi_reduction <add>, %348, %cst_77 [1] : vector<2x128xf32> to vector<2xf32>
    %350 = vector.shape_cast %349 : vector<2xf32> to vector<2x1xf32>
    %cst_78 = arith.constant 0.0123456791 : f32
    %351 = vector.broadcast %cst_78 : f32 to vector<2x1xf32>
    %352 = arith.mulf %350, %351 : vector<2x1xf32>
    %353 = vector.broadcast %352 : vector<2x1xf32> to vector<2x128xf32>
    %354 = arith.subf %346, %353 : vector<2x128xf32>
    %355 = vector.broadcast %147 : vector<1x128xf32> to vector<2x128xf32>
    %356 = arith.mulf %354, %355 : vector<2x128xf32>
    %357 = arith.mulf %356, %356 : vector<2x128xf32>
    %cst_79 = arith.constant dense<0.000000e+00> : vector<2xf32>
    %358 = vector.multi_reduction <add>, %357, %cst_79 [1] : vector<2x128xf32> to vector<2xf32>
    %359 = vector.shape_cast %358 : vector<2xf32> to vector<2x1xf32>
    %cst_80 = arith.constant 0.0123456791 : f32
    %360 = vector.broadcast %cst_80 : f32 to vector<2x1xf32>
    %361 = arith.mulf %359, %360 : vector<2x1xf32>
    %cst_81 = arith.constant 9.99999974E-6 : f32
    %362 = vector.broadcast %cst_81 : f32 to vector<2x1xf32>
    %363 = arith.addf %361, %362 : vector<2x1xf32>
    %364 = math.rsqrt %363 : vector<2x1xf32>
    %365 = vector.broadcast %364 : vector<2x1xf32> to vector<2x128xf32>
    %366 = arith.mulf %356, %365 : vector<2x128xf32>
    %367 = vector.extract_strided_slice %136 {offsets = [0, 6], sizes = [2, 1], strides = [1, 1]} : vector<2x8xf32> to vector<2x1xf32>
    %368 = vector.broadcast %367 : vector<2x1xf32> to vector<2x128xf32>
    %369 = arith.mulf %368, %366 : vector<2x128xf32>
    %370 = vector.extract_strided_slice %142 {offsets = [0, 6], sizes = [2, 1], strides = [1, 1]} : vector<2x8xf32> to vector<2x1xf32>
    %371 = vector.broadcast %370 : vector<2x1xf32> to vector<2x128xf32>
    %372 = arith.addf %369, %371 : vector<2x128xf32>
    %cst_82 = arith.constant 0.000000e+00 : f32
    %373 = vector.broadcast %cst_82 : f32 to vector<2x128xf32>
    %374 = arith.maximumf %372, %373 : vector<2x128xf32>
    %375 = vector.broadcast %147 : vector<1x128xf32> to vector<2x128xf32>
    %376 = arith.mulf %374, %375 : vector<2x128xf32>
    %377 = arith.truncf %376 : vector<2x128xf32> to vector<2x128xbf16>
    %c0_83 = arith.constant 0 : index
    %c768 = arith.constant 768 : index
    %378 = vector.load %arg17[%c0_83, %c768] : memref<2x1024xbf16, #tpu.memory_space<vmem>>, vector<2x128xbf16>
    tpu.vector_store %arg17[%c0_83, %c768], %377 {strides = array<i32>} : memref<2x1024xbf16, #tpu.memory_space<vmem>>, vector<2x128xbf16>,
    %379 = vector.extract_strided_slice %88 {offsets = [0, 896], sizes = [2, 128], strides = [1, 1]} : vector<2x1024xf32> to vector<2x128xf32>
    %380 = vector.broadcast %147 : vector<1x128xf32> to vector<2x128xf32>
    %381 = arith.mulf %379, %380 : vector<2x128xf32>
    %cst_84 = arith.constant dense<0.000000e+00> : vector<2xf32>
    %382 = vector.multi_reduction <add>, %381, %cst_84 [1] : vector<2x128xf32> to vector<2xf32>
    %383 = vector.shape_cast %382 : vector<2xf32> to vector<2x1xf32>
    %cst_85 = arith.constant 0.0123456791 : f32
    %384 = vector.broadcast %cst_85 : f32 to vector<2x1xf32>
    %385 = arith.mulf %383, %384 : vector<2x1xf32>
    %386 = vector.broadcast %385 : vector<2x1xf32> to vector<2x128xf32>
    %387 = arith.subf %379, %386 : vector<2x128xf32>
    %388 = vector.broadcast %147 : vector<1x128xf32> to vector<2x128xf32>
    %389 = arith.mulf %387, %388 : vector<2x128xf32>
    %390 = arith.mulf %389, %389 : vector<2x128xf32>
    %cst_86 = arith.constant dense<0.000000e+00> : vector<2xf32>
    %391 = vector.multi_reduction <add>, %390, %cst_86 [1] : vector<2x128xf32> to vector<2xf32>
    %392 = vector.shape_cast %391 : vector<2xf32> to vector<2x1xf32>
    %cst_87 = arith.constant 0.0123456791 : f32
    %393 = vector.broadcast %cst_87 : f32 to vector<2x1xf32>
    %394 = arith.mulf %392, %393 : vector<2x1xf32>
    %cst_88 = arith.constant 9.99999974E-6 : f32
    %395 = vector.broadcast %cst_88 : f32 to vector<2x1xf32>
    %396 = arith.addf %394, %395 : vector<2x1xf32>
    %397 = math.rsqrt %396 : vector<2x1xf32>
    %398 = vector.broadcast %397 : vector<2x1xf32> to vector<2x128xf32>
    %399 = arith.mulf %389, %398 : vector<2x128xf32>
    %400 = vector.extract_strided_slice %136 {offsets = [0, 7], sizes = [2, 1], strides = [1, 1]} : vector<2x8xf32> to vector<2x1xf32>
    %401 = vector.broadcast %400 : vector<2x1xf32> to vector<2x128xf32>
    %402 = arith.mulf %401, %399 : vector<2x128xf32>
    %403 = vector.extract_strided_slice %142 {offsets = [0, 7], sizes = [2, 1], strides = [1, 1]} : vector<2x8xf32> to vector<2x1xf32>
    %404 = vector.broadcast %403 : vector<2x1xf32> to vector<2x128xf32>
    %405 = arith.addf %402, %404 : vector<2x128xf32>
    %cst_89 = arith.constant 0.000000e+00 : f32
    %406 = vector.broadcast %cst_89 : f32 to vector<2x128xf32>
    %407 = arith.maximumf %405, %406 : vector<2x128xf32>
    %408 = vector.broadcast %147 : vector<1x128xf32> to vector<2x128xf32>
    %409 = arith.mulf %407, %408 : vector<2x128xf32>
    %410 = arith.truncf %409 : vector<2x128xf32> to vector<2x128xbf16>
    %c0_90 = arith.constant 0 : index
    %c896 = arith.constant 896 : index
    %411 = vector.load %arg17[%c0_90, %c896] : memref<2x1024xbf16, #tpu.memory_space<vmem>>, vector<2x128xbf16>
    tpu.vector_store %arg17[%c0_90, %c896], %410 {strides = array<i32>} : memref<2x1024xbf16, #tpu.memory_space<vmem>>, vector<2x128xbf16>,
    %c0_91 = arith.constant 0 : index
    %c0_92 = arith.constant 0 : index
    %412 = vector.load %arg17[%c0_91, %c0_92] : memref<2x1024xbf16, #tpu.memory_space<vmem>>, vector<2x1024xbf16>
    %c0_93 = arith.constant 0 : index
    %c0_94 = arith.constant 0 : index
    %413 = vector.load %arg14[%c0_93, %c0_94] : memref<1024x256xbf16, #tpu.memory_space<vmem>>, vector<1024x256xbf16>
    %c0_95 = arith.constant 0 : index
    %c0_96 = arith.constant 0 : index
    %414 = vector.load %arg15[%c0_95, %c0_96] : memref<1x256xf32, #tpu.memory_space<vmem>>, vector<1x256xf32>
    %cst_97 = arith.constant dense<0.000000e+00> : vector<2x256xf32>
    %415 = tpu.matmul %412, %413, %cst_97 {dimension_numbers = #tpu.dot_dimension_numbers<[1], [0], [0], [1], [0, 0, 1, 1], [], []>} : vector<2x1024xbf16>, vector<1024x256xbf16>, vector<2x256xf32> -> vector<2x256xf32>
    %416 = vector.broadcast %414 : vector<1x256xf32> to vector<2x256xf32>
    %417 = arith.addf %415, %416 : vector<2x256xf32>
    %cst_98 = arith.constant 0.000000e+00 : f32
    %418 = vector.broadcast %cst_98 : f32 to vector<2x256xf32>
    %419 = arith.maximumf %417, %418 : vector<2x256xf32>
    %c0_99 = arith.constant 0 : index
    %c0_100 = arith.constant 0 : index
    %420 = vector.load %arg16[%c0_99, %c0_100] : memref<2x256xf32, #tpu.memory_space<vmem>>, vector<2x256xf32>
    tpu.vector_store %arg16[%c0_99, %c0_100], %419 {strides = array<i32>} : memref<2x256xf32, #tpu.memory_space<vmem>>, vector<2x256xf32>,
    return
  }
}

</mosaic_0001>

<bundles_post_ra>
// kernel: generator_forward.1
= control target key start
LH: loop header
LB: loop body
LE: loop exit
PB: predicated region body
PF: predicated region fallthrough
CT: control target
= control target key end

     0   :  { %s4078_s0 = inlined_call_operand.vmem [shape: bf16[2,32], index: 0, kind: input, shape index: {}]   ;;  %s4079_s1 = inlined_call_operand.vmem [shape: f32[2,4], index: 1, kind: input, shape index: {}]   ;;  %s4080_s2 = inlined_call_operand.hbm [shape: bf16[32,256], index: 2, kind: input, shape index: {}]   ;;  %s4081_s3 = inlined_call_operand.vmem [shape: f32[1,256], index: 3, kind: input, shape index: {}]   ;;  %s4082_s4 = inlined_call_operand.vmem [shape: f32[4,256], index: 4, kind: input, shape index: {}]   ;;  %s4083_s5 = inlined_call_operand.hbm [shape: f32[1,256], index: 5, kind: input, shape index: {}]   ;;  %s4084_s6 = inlined_call_operand.hbm [shape: f32[4,256], index: 6, kind: input, shape index: {}]   ;;  %s4085_s7 = inlined_call_operand.hbm [shape: f32[1,256], index: 7, kind: input, shape index: {}]   ;;  %s4086_s8 = inlined_call_operand.hbm [shape: bf16[256,1024], index: 8, kind: input, shape index: {}]   ;;  %s4087_s9 = inlined_call_operand.vmem [shape: f32[1,1024], index: 9, kind: input, shape index: {}]   ;;  %s4088_s10 = inlined_call_operand.vmem [shape: f32[4,8], index: 10, kind: input, shape index: {}]   ;;  %s4089_s11 = inlined_call_operand.vmem [shape: f32[1,8], index: 11, kind: input, shape index: {}]   ;;  %s4090_s12 = inlined_call_operand.hbm [shape: f32[4,8], index: 12, kind: input, shape index: {}]   ;;  %s4091_s13 = inlined_call_operand.hbm [shape: f32[1,8], index: 13, kind: input, shape index: {}]   ;;  %s4092_s14 = inlined_call_operand.hbm [shape: bf16[1024,256], index: 14, kind: input, shape index: {}]   ;;  %s4093_s15 = inlined_call_operand.hbm [shape: f32[1,256], index: 15, kind: input, shape index: {}]   ;;  %s4094_s16 = inlined_call_operand.vmem [shape: f32[2,256], index: 16, kind: output, shape index: {}]  }
   0x1   :  { %4095 = sst [smem:[#allocation22_spill]] %s4078_s0 }
   0x2   :  { %21 = vsyncpa [#allocation4], 0 }
   0x3   :  { %22 = vsyncpa [#allocation6], 0 }
   0x4   :  { %23 = vsyncpa [#allocation9], 0 }
   0x5   :  { %24 = vsyncpa [#allocation12], 0 }
   0x6   :  { %25 = vsyncpa [#allocation15], 0  ;;  %s3517_s21 = smov [#allocation5]   ;;  %s3518_s23 = smov [#allocation8]  }
   0x7   :  { %s52_s22 = sshll.u32 %s3517_s21, 4  ;;  %s72_s24 = sshll.u32 %s3518_s23, 4  ;;  %s53_s22 = int_to_ptr.vmem [resolvable:$true] %s52_s22  ;;  %s73_s24 = int_to_ptr.vmem [resolvable:$true] %s72_s24 }
   0x8   :  { %s3335_s25 = scalar_lea.vmem %s53_s22, 32  ;;  %p3340_p1 = scmp.lt.s32.totalorder %s53_s22, %s53_s22 }
   0x9   :  { %p3336_p0 = scmp.ne.s32.totalorder %s53_s22, %s3335_s25  ;;  %p3341_p2 = scmp.lt.s32.totalorder %s3335_s25, %s3335_s25 }
   0xb   :  { %p3342_p3 = por %p3341_p2, %p3340_p1 }
   0xd   :  { %p3343_p4 = pnand %p3342_p3, %p3336_p0 }
   0xf   :  { %3346 = shalt.err (!%p3343_p4)
}
  0x10   :  { %55 = dma.hbm_to_vmem [thread:$0]  %s4083_s5, 32, %s53_s22, [#allocation6]  }
  0x11   :  { %s3355_s28 = scalar_lea.vmem %s73_s24, 32  ;;  %p3360_p6 = scmp.lt.s32.totalorder %s73_s24, %s73_s24 }
  0x12   :  { %p3356_p5 = scmp.ne.s32.totalorder %s73_s24, %s3355_s28  ;;  %p3361_p7 = scmp.lt.s32.totalorder %s3355_s28, %s3355_s28 }
  0x14   :  { %p3362_p8 = por %p3361_p7, %p3360_p6 }
  0x16   :  { %p3363_p9 = pnand %p3362_p8, %p3356_p5 }
  0x18   :  { %3366 = shalt.err (!%p3363_p9)
}
  0x19   :  { %75 = dma.hbm_to_vmem [thread:$0]  %s4085_s7, 32, %s73_s24, [#allocation9]  }
  0x1a   :  { %s3519_s0 = smov [#allocation11]  }
  0x1b   :  { %s100_s17 = sshll.u32 %s3519_s0, 4  ;;  %s101_s17 = int_to_ptr.vmem [resolvable:$true] %s100_s17 }
  0x1c   :  { %s3375_s18 = scalar_lea.vmem %s101_s17, 64  ;;  %p3380_p11 = scmp.lt.s32.totalorder %s101_s17, %s101_s17 }
  0x1d   :  { %p3376_p10 = scmp.ne.s32.totalorder %s101_s17, %s3375_s18  ;;  %p3381_p12 = scmp.lt.s32.totalorder %s3375_s18, %s3375_s18 }
  0x1f   :  { %p3382_p13 = por %p3381_p12, %p3380_p11 }
  0x21   :  { %p3383_p0 = pnand %p3382_p13, %p3376_p10 }
  0x23   :  { %3386 = shalt.err (!%p3383_p0)
}
  0x24   :  { %103 = dma.hbm_to_vmem [thread:$0]  %s4090_s12, 64, %s101_s17, [#allocation12]  }
  0x25   :  { %s3520_s20 = smov [#allocation14]   ;;  %s3521_s22 = smov [#allocation3]  }
  0x26   :  { %s119_s21 = sshll.u32 %s3520_s20, 4  ;;  %s35_s23 = sshll.u32 %s3521_s22, 4  ;;  %s120_s21 = int_to_ptr.vmem [resolvable:$true] %s119_s21  ;;  %s36_s23 = int_to_ptr.vmem [resolvable:$true] %s35_s23 }
  0x27   :  { %s3395_s7 = scalar_lea.vmem %s120_s21, 16384  ;;  %p3400_p2 = scmp.lt.s32.totalorder %s120_s21, %s120_s21 }
  0x28   :  { %p3396_p1 = scmp.ne.s32.totalorder %s120_s21, %s3395_s7  ;;  %p3401_p3 = scmp.lt.s32.totalorder %s3395_s7, %s3395_s7 }
  0x2a   :  { %p3402_p4 = por %p3401_p3, %p3400_p2 }
  0x2c   :  { %p3403_p5 = pnand %p3402_p4, %p3396_p1 }
  0x2e   :  { %3406 = shalt.err (!%p3403_p5)
}
  0x2f   :  { %s3522_s24 = smov 128   ;;  %s3523_s25 = smov 8  }
  0x30   :  { %125 = dma.hbm_to_vmem [thread:$0]  %s4092_s14, 16384, %s120_s21, [#allocation15], %s3522_s24, %s3522_s24, %s3523_s25  }
  0x31   :  { %s3415_s12 = scalar_lea.vmem %s36_s23, 512  ;;  %p3420_p7 = scmp.lt.s32.totalorder %s36_s23, %s36_s23 }
  0x32   :  { %p3416_p6 = scmp.ne.s32.totalorder %s36_s23, %s3415_s12  ;;  %p3421_p8 = scmp.lt.s32.totalorder %s3415_s12, %s3415_s12 }
  0x34   :  { %p3422_p9 = por %p3421_p8, %p3420_p7 }
  0x36   :  { %p3423_p10 = pnand %p3422_p9, %p3416_p6 }
  0x38   :  { %3426 = shalt.err (!%p3423_p10)
}
  0x39   :  { %41 = dma.hbm_to_vmem [thread:$0]  %s4080_s2, 512, %s36_s23, [#allocation4], %s3522_s24, %s3522_s24, %s3523_s25  }
  0x3a   :  { %s3524_s30 = smov [#allocation7]   ;;  %s3525_s17 = smov [#allocation10]  }
  0x3b   :  { %s62_s0 = sshll.u32 %s3524_s30, 4  ;;  %s81_s18 = sshll.u32 %s3525_s17, 4  ;;  %s63_s0 = int_to_ptr.vmem [resolvable:$true] %s62_s0  ;;  %s82_s18 = int_to_ptr.vmem [resolvable:$true] %s81_s18 }
  0x3c   :  { %s3435_s5 = scalar_lea.vmem %s63_s0, 128  ;;  %p3440_p12 = scmp.lt.s32.totalorder %s63_s0, %s63_s0 }
  0x3d   :  { %p3436_p11 = scmp.ne.s32.totalorder %s63_s0, %s3435_s5  ;;  %p3441_p13 = scmp.lt.s32.totalorder %s3435_s5, %s3435_s5 }
  0x3f   :  { %p3442_p0 = por %p3441_p13, %p3440_p12 }
  0x41   :  { %p3443_p1 = pnand %p3442_p0, %p3436_p11 }
  0x43   :  { %3446 = shalt.err (!%p3443_p1)
}
  0x44   :  { %65 = dma.hbm_to_vmem [thread:$0]  %s4084_s6, 128, %s63_s0, [#allocation6]  }
  0x45   :  { %s3455_s20 = scalar_lea.vmem %s82_s18, 16384  ;;  %p3460_p3 = scmp.lt.s32.totalorder %s82_s18, %s82_s18 }
  0x46   :  { %p3456_p2 = scmp.ne.s32.totalorder %s82_s18, %s3455_s20  ;;  %p3461_p4 = scmp.lt.s32.totalorder %s3455_s20, %s3455_s20 }
  0x48   :  { %p3462_p5 = por %p3461_p4, %p3460_p3 }
  0x4a   :  { %p3463_p6 = pnand %p3462_p5, %p3456_p2 }
  0x4c   :  { %3466 = shalt.err (!%p3463_p6)
}
  0x4d   :  { %s3526_s2 = smov 512   ;;  %s3527_s21 = smov 32  }
  0x4e   :  { %87 = dma.hbm_to_vmem [thread:$0]  %s4086_s8, 16384, %s82_s18, [#allocation9], %s3526_s2, %s3526_s2, %s3527_s21  }
  0x4f   :  { %s3528_s7 = smov [#allocation13]   ;;  %s3529_s25 = smov [#allocation16]  }
  0x50   :  { %s110_s24 = sshll.u32 %s3528_s7, 4  ;;  %s132_s26 = sshll.u32 %s3529_s25, 4  ;;  %s111_s24 = int_to_ptr.vmem [resolvable:$true] %s110_s24  ;;  %s133_s26 = int_to_ptr.vmem [resolvable:$true] %s132_s26 }
  0x51   :  { %s3475_s6 = scalar_lea.vmem %s111_s24, 16  ;;  %s3479_s27 = scalar_lea.vmem %s111_s24, 32 }
  0x52   :  { %p3476_p7 = scmp.ne.s32.totalorder %s111_s24, %s3475_s6  ;;  %p3480_p8 = scmp.lt.s32.totalorder %s111_s24, %s111_s24 }
  0x53   :  { %p3481_p9 = scmp.lt.s32.totalorder %s3479_s27, %s3475_s6 }
  0x55   :  { %p3482_p10 = por %p3481_p9, %p3480_p8 }
  0x57   :  { %p3483_p11 = pnand %p3482_p10, %p3476_p7 }
  0x59   :  { %3486 = shalt.err (!%p3483_p11)
}
  0x5a   :  { %113 = dma.hbm_to_vmem [thread:$0]  %s4091_s13, 16, %s111_s24, [#allocation12]  }
  0x5b   :  { %s3495_s29 = scalar_lea.vmem %s133_s26, 32  ;;  %p3500_p13 = scmp.lt.s32.totalorder %s133_s26, %s133_s26 }
  0x5c   :  { %p3496_p12 = scmp.ne.s32.totalorder %s133_s26, %s3495_s29  ;;  %p3501_p0 = scmp.lt.s32.totalorder %s3495_s29, %s3495_s29 }
  0x5e   :  { %p3502_p1 = por %p3501_p0, %p3500_p13 }
  0x60   :  { %p3503_p2 = pnand %p3502_p1, %p3496_p12 }
  0x62   :  { %3506 = shalt.err (!%p3503_p2)
}
  0x63   :  { %135 = dma.hbm_to_vmem [thread:$0]  %s4093_s15, 32, %s133_s26, [#allocation15]  }
  0x64   :  { %3507 = dma.done.wait [#allocation4], 512  }
  0x65   :  { %3508 = vsyncadd [#allocation4], 4294966784 }
  0x66   :  { %3509 = dma.done.wait [#allocation6], 160  }
  0x67   :  { %3510 = vsyncadd [#allocation6], 4294967136 }
  0x68   :  { %3511 = dma.done.wait [#allocation9], 16416  }
  0x69   :  { %3512 = vsyncadd [#allocation9], 4294950880 }
  0x6a   :  { %3513 = dma.done.wait [#allocation12], 80  }
  0x6b   :  { %3514 = vsyncadd [#allocation12], 4294967216 }
  0x6c   :  { %3515 = dma.done.wait [#allocation15], 16416  }
  0x6d   :  { %3516 = vsyncadd [#allocation15], 4294950880  ;;  %v3530_v0 = vmov 0   ;;  %v3110_v1 = vld [vmem:[#allocation3 + $0x14] ss:$8 sps:$4 sm:$0xff]   ;;  %s4096_s0 = sld [smem:[#allocation22_spill]]  ;;  %v176_v6 = vlaneseq }
  0x6e   :  { %242 = vmatprep.mubr.bf16.mxu0 %v3530_v0  ;;  %3089 = vset.pattern.permute.xlu1 %v3530_v0  ;;  %v3112_v2 = vld [vmem:[#allocation3 + $0x10] ss:$8 sps:$4 sm:$0xff]   ;;  %v3113_v3 = vld [vmem:[#allocation3 + $0x4] ss:$8 sps:$4 sm:$0xff]   ;;  %v3115_v4 = vld [vmem:[#allocation3] ss:$8 sps:$4 sm:$0xff]  }
  0x6f   :  { %222 = vmatprep.subr.bf16.mxu0 %v3110_v1  ;;  %vm206_vm0 = vcmask 261120   ;;  %v3658_v7 = vshrl.u32 %v176_v6, 7  ;;  %v170_v9 = vld [vmem:[%s4081_s3] sm:$0x3]  ;;  %vm251_vm1 = vcmask 1041408   ;;  %v3531_v23 = vmov 2  }
  0x70   :  { %223 = vmatpush1.bf16.msra.mxu0 %v3112_v2  ;;  %v3682_v22 = vld [vmem:[%s4079_s1] sm:$0x3]  ;;  %3091 = vset.pattern.permute.xlu0 %v3531_v23  ;;  %v3532_v24 = vmov 1   ;;  %v554_v25 = vld [vmem:[#allocation10 + $0x1c0] sm:$0xff]  ;;  %v3533_v28 = vmov 3  }
  0x71   :  { %224 = vmatprep.subr.bf16.mxu0 %v3113_v3  ;;  %v3661_v8 = vsub.s32 0, %v3658_v7  ;;  %v3667_v10 = vsub.s32 1, %v3658_v7  ;;  %275 = vperm.xlu1 %3089, %v3682_v22   ;;  %v558_v26 = vld [vmem:[#allocation10 + $0x1e0] sm:$0xff]  ;;  %v555_v27 = vld [vmem:[#allocation10 + $0x1c8] sm:$0xff] }
  0x72   :  { %v2863_v29 = vcombine.high %v554_v25, %v558_v26  ;;  %v559_v30 = vld [vmem:[#allocation10 + $0x1e8] sm:$0xff]  ;;  %v2862_v31 = vcombine.low %v554_v25, %v558_v26  ;;  %v546_v32 = vld [vmem:[#allocation10 + $0x180] sm:$0xff] }
  0x73   :  { %v164_v5 = vld [vmem:[%s4096_s0] sm:$0x1]  ;;  %v179_v11 = vrot.slane %v170_v9, %v3661_v8  ;;  %v183_v12 = vrot.slane %v170_v9, %v3667_v10  ;;  %v550_v33 = vld [vmem:[#allocation10 + $0x1a0] sm:$0xff]  ;;  %v2864_v34 = vcombine.low %v555_v27, %v559_v30  ;;  %v2865_v35 = vcombine.high %v555_v27, %v559_v30 }
  0x74   :  { %225 = vmatpush1.bf16.msra.mxu0 %v3115_v4  ;;  %v2855_v36 = vcombine.high %v546_v32, %v550_v33  ;;  %v547_v37 = vld [vmem:[#allocation10 + $0x188] sm:$0xff]  ;;  %v538_v39 = vld [vmem:[#allocation10 + $0x140] sm:$0xff]  ;;  %1308 = vmatprep.subr.bf16.mxu1 %v2863_v29  ;;  %v2854_v44 = vcombine.low %v546_v32, %v550_v33 }
  0x75   :  { %3090 = vset.pattern.permute.xlu1 %v3532_v24  ;;  %v551_v38 = vld [vmem:[#allocation10 + $0x1a8] sm:$0xff]  ;;  %v542_v41 = vld [vmem:[#allocation10 + $0x160] sm:$0xff]  ;;  %1349 = vmatprep.subr.bf16.mxu0 %v2865_v35 }
  0x76   :  { %347 = vperm.xlu1 %3090, %v3682_v22   ;;  %v2857_v40 = vcombine.high %v547_v37, %v551_v38  ;;  %v539_v42 = vld [vmem:[#allocation10 + $0x148] sm:$0xff]  ;;  %1309 = vmatpush1.bf16.msra.mxu1 %v2862_v31  ;;  %v2856_v45 = vcombine.low %v547_v37, %v551_v38  ;;  %v2847_v46 = vcombine.high %v538_v39, %v542_v41  ;;  %v530_v48 = vld [vmem:[#allocation10 + $0x100] sm:$0xff] }
  0x77   :  { %2805 = vmatmul.mubr.msk.bf16.vlgmr.msra.gmra.mxu0 %vm206_vm0, %v164_v5  ;;  %v543_v43 = vld [vmem:[#allocation10 + $0x168] sm:$0xff]  ;;  %1310 = vmatprep.subr.bf16.mxu1 %v2855_v36  ;;  %v534_v49 = vld [vmem:[#allocation10 + $0x120] sm:$0xff]  ;;  %v2846_v52 = vcombine.low %v538_v39, %v542_v41 }
  0x78   :  { %1350 = vmatpush1.bf16.msra.mxu0 %v2864_v34  ;;  %v2849_v47 = vcombine.high %v539_v42, %v543_v43  ;;  %v531_v50 = vld [vmem:[#allocation10 + $0x108] sm:$0xff]  ;;  %v2848_v53 = vcombine.low %v539_v42, %v543_v43  ;;  %v2839_v54 = vcombine.high %v530_v48, %v534_v49  ;;  %v522_v56 = vld [vmem:[#allocation10 + $0xc0] sm:$0xff]  ;;  %v2838_v60 = vcombine.low %v530_v48, %v534_v49 }
  0x79   :  { %1351 = vmatprep.subr.bf16.mxu0 %v2857_v40  ;;  %v535_v51 = vld [vmem:[#allocation10 + $0x128] sm:$0xff]  ;;  %v526_v57 = vld [vmem:[#allocation10 + $0xe0] sm:$0xff] }
  0x7a   :  { %3092 = vset.pattern.permute.xlu1 %v3533_v28  ;;  %1311 = vmatpush1.bf16.msra.mxu1 %v2854_v44  ;;  %v2841_v55 = vcombine.high %v531_v50, %v535_v51  ;;  %v523_v58 = vld [vmem:[#allocation10 + $0xc8] sm:$0xff]  ;;  %v2840_v61 = vcombine.low %v531_v50, %v535_v51  ;;  %v2831_v62 = vcombine.high %v522_v56, %v526_v57  ;;  %v514_v1 = vld [vmem:[#allocation10 + $0x80] sm:$0xff] }
  0x7b   :  { %443 = vperm.xlu1 %3092, %v3682_v22   ;;  %1312 = vmatprep.subr.bf16.mxu1 %v2847_v46  ;;  %v527_v59 = vld [vmem:[#allocation10 + $0xe8] sm:$0xff]  ;;  %v518_v2 = vld [vmem:[#allocation10 + $0xa0] sm:$0xff]  ;;  %v2830_v5 = vcombine.low %v522_v56, %v526_v57 }
  0x7c   :  { %1352 = vmatpush1.bf16.msra.mxu0 %v2856_v45  ;;  %v2833_v63 = vcombine.high %v523_v58, %v527_v59  ;;  %v515_v3 = vld [vmem:[#allocation10 + $0x88] sm:$0xff]  ;;  %v2832_v9 = vcombine.low %v523_v58, %v527_v59  ;;  %v498_v26 = vld [vmem:[#allocation10] sm:$0xff] }
  0x7d   :  { %1353 = vmatprep.subr.bf16.mxu0 %v2849_v47  ;;  %v519_v4 = vld [vmem:[#allocation10 + $0xa8] sm:$0xff]  ;;  %v502_v27 = vld [vmem:[#allocation10 + $0x20] sm:$0xff] }
  0x7e   :  { %1313 = vmatpush1.bf16.msra.mxu1 %v2846_v52  ;;  %v499_v29 = vld [vmem:[#allocation10 + $0x8] sm:$0xff]  ;;  %v2807_v33 = vcombine.high %v498_v26, %v502_v27  ;;  %v618_v35 = vld [vmem:[#allocation10 + $0x3c0] sm:$0xff]  ;;  %v2806_v39 = vcombine.low %v498_v26, %v502_v27 }
  0x7f   :  { %3093 = vset.pattern.permute.xlu1 %v3530_v0  ;;  %1314 = vmatprep.subr.bf16.mxu1 %v2839_v54  ;;  %v503_v30 = vld [vmem:[#allocation10 + $0x28] sm:$0xff]  ;;  %v622_v36 = vld [vmem:[#allocation10 + $0x3e0] sm:$0xff] }
  0x80   :  { %1354 = vmatpush1.bf16.msra.mxu0 %v2848_v53  ;;  %v2809_v34 = vcombine.high %v499_v29, %v503_v30  ;;  %v619_v37 = vld [vmem:[#allocation10 + $0x3c8] sm:$0xff]  ;;  %v2808_v40 = vcombine.low %v499_v29, %v503_v30  ;;  %v2927_v41 = vcombine.high %v618_v35, %v622_v36  ;;  %v2926_v43 = vcombine.low %v618_v35, %v622_v36  ;;  %v610_v54 = vld [vmem:[#allocation10 + $0x380] sm:$0xff] }
  0x81   :  { %1355 = vmatprep.subr.bf16.mxu0 %v2841_v55  ;;  %v623_v38 = vld [vmem:[#allocation10 + $0x3e8] sm:$0xff]  ;;  %v614_v55 = vld [vmem:[#allocation10 + $0x3a0] sm:$0xff] }
  0x82   :  { %1315 = vmatpush1.bf16.msra.mxu1 %v2838_v60  ;;  %v2929_v42 = vcombine.high %v619_v37, %v623_v38  ;;  %v2928_v44 = vcombine.low %v619_v37, %v623_v38  ;;  %v611_v56 = vld [vmem:[#allocation10 + $0x388] sm:$0xff]  ;;  %v2918_v59 = vcombine.low %v610_v54, %v614_v55  ;;  %v602_v60 = vld [vmem:[#allocation10 + $0x340] sm:$0xff] }
  0x83   :  { %1316 = vmatprep.subr.bf16.mxu1 %v2831_v62  ;;  %v615_v57 = vld [vmem:[#allocation10 + $0x3a8] sm:$0xff]  ;;  %v578_v27 = vld [vmem:[#allocation10 + $0x280] sm:$0xff] }
  0x84   :  { %1356 = vmatpush1.bf16.msra.mxu0 %v2840_v61  ;;  %v2920_v58 = vcombine.low %v611_v56, %v615_v57  ;;  %v606_v61 = vld [vmem:[#allocation10 + $0x360] sm:$0xff]  ;;  %v571_v38 = vld [vmem:[#allocation10 + $0x248] sm:$0xff] }
  0x85   :  { %1357 = vmatprep.subr.bf16.mxu0 %v2833_v63  ;;  %v2911_v62 = vcombine.high %v602_v60, %v606_v61  ;;  %v2910_v63 = vcombine.low %v602_v60, %v606_v61  ;;  %v582_v29 = vld [vmem:[#allocation10 + $0x2a0] sm:$0xff] }
  0x86   :  { %1317 = vmatpush1.bf16.msra.mxu1 %v2830_v5  ;;  %v594_v5 = vld [vmem:[#allocation10 + $0x300] sm:$0xff] }
  0x87   :  { %v570_v35 = vld [vmem:[#allocation10 + $0x240] sm:$0xff] }
  0x88   :  { %1358 = vmatpush1.bf16.msra.mxu0 %v2832_v9  ;;  %v598_v9 = vld [vmem:[#allocation10 + $0x320] sm:$0xff] }
  0x89   :  { %v574_v36 = vld [vmem:[#allocation10 + $0x260] sm:$0xff] }
 0x137   :  { %v244_v13 = vpop.f32.mrf.mxu0 }
 0x138   :  { %v3671_v14 = vadd.f32 %v244_v13, %v179_v11  ;;  %v2823_v11 = vcombine.high %v514_v1, %v518_v2  ;;  %v506_v13 = vld [vmem:[#allocation10 + $0x40] sm:$0xff] }
 0x139   :  { %v246_v15 = vpop.f32.mrf.mxu0 }
 0x13a   :  { %v3673_v16 = vadd.f32 %v246_v15, %v183_v12  ;;  %v252_v18 = vsel %vm251_vm1, %v3671_v14, 0.0  ;;  %v2825_v12 = vcombine.high %v515_v3, %v519_v4  ;;  %v510_v15 = vld [vmem:[#allocation10 + $0x60] sm:$0xff]  ;;  %1318 = vmatprep.subr.bf16.mxu1 %v2823_v11  ;;  %v595_v11 = vld [vmem:[#allocation10 + $0x308] sm:$0xff] }
 0x13b   :  { %v248_v17 = vpop.f32.mrf.mxu0  ;;  %v2814_v31 = vcombine.low %v506_v13, %v510_v15 }
 0x13c   :  { %v253_v19 = vsel %vm251_vm1, %v3673_v16, 0.0  ;;  %v507_v17 = vld [vmem:[#allocation10 + $0x48] sm:$0xff]  ;;  %1359 = vmatprep.subr.bf16.mxu0 %v2825_v12 }
 0x13d   :  { %v249_v20 = vpop.f32.mrf.mxu0  ;;  %v254_v21 = vadd.f32 %v253_v19, %v252_v18  ;;  %v511_v18 = vld [vmem:[#allocation10 + $0x68] sm:$0xff]  ;;  %v2822_v19 = vcombine.low %v514_v1, %v518_v2 }
 0x13e   :  { %v2824_v20 = vcombine.low %v515_v3, %v519_v4  ;;  %v2817_v25 = vcombine.high %v507_v17, %v511_v18  ;;  %v2816_v32 = vcombine.low %v507_v17, %v511_v18  ;;  %v603_v1 = vld [vmem:[#allocation10 + $0x348] sm:$0xff]  ;;  %v2903_v17 = vcombine.high %v594_v5, %v598_v9 }
 0x13f   :  { %255 = vadd.xlane.f32.xlu0 %v254_v21  ;;  %v2815_v21 = vcombine.high %v506_v13, %v510_v15  ;;  %1319 = vmatpush1.bf16.msra.mxu1 %v2822_v19  ;;  %v607_v2 = vld [vmem:[#allocation10 + $0x368] sm:$0xff]  ;;  %v586_v13 = vld [vmem:[#allocation10 + $0x2c0] sm:$0xff] }
 0x140   :  { %1360 = vmatpush1.bf16.msra.mxu0 %v2824_v20  ;;  %v2912_v3 = vcombine.low %v603_v1, %v607_v2  ;;  %v2913_v4 = vcombine.high %v603_v1, %v607_v2  ;;  %v599_v12 = vld [vmem:[#allocation10 + $0x328] sm:$0xff]  ;;  %v590_v15 = vld [vmem:[#allocation10 + $0x2e0] sm:$0xff]  ;;  %v3731_v2 = vld [vmem:[#allocation7] sm:$0xff] }
 0x141   :  { %1320 = vmatprep.subr.bf16.mxu1 %v2815_v21  ;;  %1361 = vmatprep.subr.bf16.mxu0 %v2817_v25  ;;  %v587_v18 = vld [vmem:[#allocation10 + $0x2c8] sm:$0xff]  ;;  %v2904_v20 = vcombine.low %v595_v11, %v599_v12  ;;  %v2905_v21 = vcombine.high %v595_v11, %v599_v12  ;;  %v2902_v25 = vcombine.low %v594_v5, %v598_v9  ;;  %v172_v12 = vld [vmem:[#allocation5] sm:$0x3] }
 0x142   :  { %v591_v19 = vld [vmem:[#allocation10 + $0x2e8] sm:$0xff]  ;;  %v2895_v26 = vcombine.high %v586_v13, %v590_v15  ;;  %v2894_v30 = vcombine.low %v586_v13, %v590_v15  ;;  %v316_v5 = vrot.slane %v3731_v2, %v3661_v8  ;;  %v3747_v15 = vsub.s32 5, %v3658_v7 }
 0x143   :  { %1321 = vmatpush1.bf16.msra.mxu1 %v2814_v31  ;;  %v2896_v31 = vcombine.low %v587_v18, %v591_v19  ;;  %v3743_v11 = vld [vmem:[%s4088_s10] sm:$0xf] }
 0x144   :  { %1362 = vmatpush1.bf16.msra.mxu0 %v2816_v32  ;;  %1322 = vmatprep.subr.bf16.mxu1 %v2807_v33  ;;  %v579_v32 = vld [vmem:[#allocation10 + $0x288] sm:$0xff] }
 0x145   :  { %1363 = vmatprep.subr.bf16.mxu0 %v2809_v34  ;;  %v583_v33 = vld [vmem:[#allocation10 + $0x2a8] sm:$0xff]  ;;  %v2887_v34 = vcombine.high %v578_v27, %v582_v29 }
 0x146   :  { %v2889_v37 = vcombine.high %v579_v32, %v583_v33 }
 0x147   :  { %1323 = vmatpush1.bf16.msra.mxu1 %v2806_v39  ;;  %v575_v39 = vld [vmem:[#allocation10 + $0x268] sm:$0xff] }
 0x148   :  { %1364 = vmatpush1.bf16.msra.mxu0 %v2808_v40  ;;  %1324 = vmatprep.subr.bf16.mxu1 %v2927_v41  ;;  %v2888_v40 = vcombine.low %v579_v32, %v583_v33  ;;  %v562_v41 = vld [vmem:[#allocation10 + $0x200] sm:$0xff]  ;;  %v3766_v33 = vsub.s32 2, %v3658_v7 }
 0x149   :  { %1365 = vmatprep.subr.bf16.mxu0 %v2929_v42  ;;  %v3705_v42 = vld [vmem:[#allocation10 + $0x1d0] sm:$0xff] }
 0x14b   :  { %1325 = vmatpush2.bf16.msra.mxu1 %v2926_v43  ;;  %v3707_v43 = vld [vmem:[#allocation10 + $0x1f0] sm:$0xff] }
 0x14c   :  { %1366 = vmatpush2.bf16.msra.mxu0 %v2928_v44  ;;  %v2886_v44 = vcombine.low %v578_v27, %v582_v29  ;;  %v2867_v60 = vcombine.high %v3705_v42, %v3707_v43  ;;  %v307_v27 = vrot.slane %v172_v12, %v3667_v10 }
 0x1c8   :  { %v256_v45 = vpop.xlane.xlu0 %255 }
 0x1c9   :  { %v258_v46 = vmul.f32 0.00390625, %v256_v45  ;;  %v2879_v45 = vcombine.high %v570_v35, %v574_v36 }
 0x1cb   :  { %v3692_v47 = vsub.f32 %v3671_v14, %v258_v46  ;;  %v3695_v48 = vsub.f32 %v3673_v16, %v258_v46  ;;  %v2919_v14 = vcombine.high %v610_v54, %v614_v55  ;;  %v2921_v16 = vcombine.high %v611_v56, %v615_v57  ;;  %v566_v46 = vld [vmem:[#allocation10 + $0x220] sm:$0xff] }
 0x1cc   :  { %v2878_v54 = vcombine.low %v570_v35, %v574_v36  ;;  %v2866_v55 = vcombine.low %v3705_v42, %v3707_v43  ;;  %v2880_v56 = vcombine.low %v571_v38, %v575_v39  ;;  %v532_v42 = vld [vmem:[#allocation10 + $0x110] sm:$0xff] }
 0x1cd   :  { %v261_v49 = vmul.f32 %v3692_v47, %v3692_v47  ;;  %v262_v50 = vmul.f32 %v3695_v48, %v3695_v48  ;;  %1326 = vmatprep.subr.bf16.mxu1 %v2919_v14  ;;  %1367 = vmatprep.subr.bf16.mxu0 %v2921_v16  ;;  %v2871_v14 = vcombine.high %v562_v41, %v566_v46  ;;  %v536_v43 = vld [vmem:[#allocation10 + $0x130] sm:$0xff] }
 0x1ce   :  { %1327 = vmatpush2.bf16.msra.mxu1 %v2918_v59  ;;  %1368 = vmatpush2.bf16.msra.mxu0 %v2920_v58  ;;  %v2870_v16 = vcombine.low %v562_v41, %v566_v46  ;;  %v2934_v41 = vld [vmem:[%s4089_s11] ss:$0 sm:$0xff] }
 0x1cf   :  { %v263_v51 = vsel %vm251_vm1, %v261_v49, 0.0  ;;  %v264_v52 = vsel %vm251_vm1, %v262_v50, 0.0  ;;  %1328 = vmatprep.subr.bf16.mxu1 %v2911_v62  ;;  %1369 = vmatprep.subr.bf16.mxu0 %v2913_v4  ;;  %v3709_v49 = vld [vmem:[#allocation10 + $0x1d8] sm:$0xff]  ;;  %v3724_v62 = vld [vmem:[%s4082_s4] sm:$0xff] }
 0x1d0   :  { %v265_v53 = vadd.f32 %v264_v52, %v263_v51  ;;  %v3711_v50 = vld [vmem:[#allocation10 + $0x1f8] sm:$0xff]  ;;  %v2881_v51 = vcombine.high %v571_v38, %v575_v39  ;;  %v563_v52 = vld [vmem:[#allocation10 + $0x208] sm:$0xff]  ;;  %v282_v1 = vrot.slane %v3724_v62, %v3661_v8  ;;  %v379_v38 = vrot.slane %v3731_v2, %v3747_v15 }
 0x1d1   :  { %v2868_v57 = vcombine.low %v3709_v49, %v3711_v50  ;;  %v2869_v61 = vcombine.high %v3709_v49, %v3711_v50  ;;  %v1503_v39 = vrot.slane %v3743_v11, %v3667_v10  ;;  %v533_v49 = vld [vmem:[#allocation10 + $0x118] sm:$0xff] }
 0x1d2   :  { %266 = vadd.xlane.f32.xlu0 %v265_v53  ;;  %1329 = vmatpush2.bf16.msra.mxu1 %v2910_v63  ;;  %v567_v53 = vld [vmem:[#allocation10 + $0x228] sm:$0xff]  ;;  %v3727_v63 = vsub.s32 4, %v3658_v7  ;;  %v292_v4 = vrot.slane %v282_v1, %v3661_v8  ;;  %v389_v1 = vrot.slane %v379_v38, %v3667_v10  ;;  %v537_v50 = vld [vmem:[#allocation10 + $0x138] sm:$0xff] }
 0x1d3   :  { %1370 = vmatpush2.bf16.msra.mxu0 %v2912_v3  ;;  %1330 = vmatprep.subr.bf16.mxu1 %v2903_v17  ;;  %v2873_v58 = vcombine.high %v563_v52, %v567_v53  ;;  %v2872_v59 = vcombine.low %v563_v52, %v567_v53  ;;  %v3749_v17 = vpop.permute.xlu1 %275 }
 0x1d4   :  { %1371 = vmatprep.subr.bf16.mxu0 %v2905_v21  ;;  %v286_v3 = vrot.slane %v3724_v62, %v3727_v63  ;;  %v320_v9 = vrot.slane %v3731_v2, %v3727_v63  ;;  %v326_v21 = vrot.slane %v316_v5, %v3661_v8  ;;  %v423_v5 = vrot.slane %v3731_v2, %v3766_v33 }
 0x1d6   :  { %1331 = vmatpush2.bf16.msra.mxu1 %v2902_v25  ;;  %v296_v13 = vrot.slane %v286_v3, %v3661_v8  ;;  %v330_v25 = vrot.slane %v320_v9, %v3661_v8 }
 0x1d7   :  { %1372 = vmatpush2.bf16.msra.mxu0 %v2904_v20  ;;  %1332 = vmatprep.subr.bf16.mxu1 %v2895_v26  ;;  %v303_v20 = vrot.slane %v172_v12, %v3661_v8  ;;  %v297_v26 = vmul.f32 %v292_v4, %v3749_v17 }
 0x1d8   :  { %v298_v29 = vmul.f32 %v296_v13, %v3749_v17  ;;  %v332_v46 = vmul.f32 %v330_v25, %v3749_v17 }
 0x1da   :  { %1333 = vmatpush2.bf16.msra.mxu1 %v2894_v30  ;;  %v357_v30 = vrot.slane %v3724_v62, %v3747_v15  ;;  %v311_v52 = vadd.f32 %v307_v27, %v298_v29 }
 0x1db   :  { %1334 = vmatprep.subr.bf16.mxu1 %v2887_v34  ;;  %v3769_v34 = vsub.s32 6, %v3658_v7 }
 0x1dd   :  { %v427_v9 = vrot.slane %v3731_v2, %v3769_v34 }
 0x1de   :  { %1335 = vmatpush2.bf16.msra.mxu1 %v2886_v44  ;;  %v310_v44 = vadd.f32 %v303_v20, %v297_v26 }
 0x1df   :  { %1336 = vmatprep.subr.bf16.mxu1 %v2879_v45  ;;  %v331_v45 = vmul.f32 %v326_v21, %v3749_v17 }
 0x1e2   :  { %1337 = vmatpush2.bf16.msra.mxu1 %v2878_v54  ;;  %v367_v54 = vrot.slane %v357_v30, %v3667_v10 }
 0x1e3   :  { %1338 = vmatprep.subr.bf16.mxu1 %v2871_v14 }
 0x1e6   :  { %1339 = vmatpush2.bf16.msra.mxu1 %v2870_v16  ;;  %v405_v16 = vrot.slane %v3724_v62, %v3769_v34 }
 0x1e7   :  { %1390 = vmatprep.subr.bf16.mxu1 %v2867_v60 }
 0x1e8   :  { %395 = vperm.xlu0 %3091, %v3682_v22   ;;  %v2897_v22 = vcombine.high %v587_v18, %v591_v19  ;;  %v174_v18 = vld [vmem:[#allocation8] sm:$0x3]  ;;  %v1479_v19 = vrot.slane %v3743_v11, %v3661_v8  ;;  %v415_v21 = vrot.slane %v405_v16, %v3766_v33 }
 0x1e9   :  { %v341_v32 = vrot.slane %v174_v18, %v3667_v10 }
 0x1ea   :  { %1373 = vmatprep.subr.bf16.mxu0 %v2897_v22  ;;  %v353_v22 = vrot.slane %v3724_v62, %v3667_v10  ;;  %v1480_v36 = vmul.f32 %v1479_v19, %v3749_v17 }
 0x1eb   :  { %1374 = vmatpush2.bf16.msra.mxu0 %v2896_v31  ;;  %v337_v31 = vrot.slane %v174_v18, %v3661_v8  ;;  %v1515_v18 = vrot.slane %v3743_v11, %v3766_v33  ;;  %v345_v29 = vadd.f32 %v341_v32, %v332_v46 }
 0x1ec   :  { %3094 = vset.pattern.permute.xlu0 %v3532_v24  ;;  %1375 = vmatprep.subr.bf16.mxu0 %v2889_v37  ;;  %v375_v37 = vrot.slane %v3731_v2, %v3667_v10  ;;  %v363_v53 = vrot.slane %v353_v22, %v3667_v10  ;;  %v1487_v60 = vadd.f32 %v2934_v41, %v1480_v36 }
 0x1ed   :  { %v344_v4 = vadd.f32 %v337_v31, %v331_v45  ;;  %v437_v36 = vrot.slane %v427_v9, %v3766_v33 }
 0x1ef   :  { %1376 = vmatpush2.bf16.msra.mxu0 %v2888_v40 }
 0x1f0   :  { %1377 = vmatprep.subr.bf16.mxu0 %v2881_v51  ;;  %v3783_v51 = vpop.permute.xlu1 %347 }
 0x1f1   :  { %v1504_v3 = vmul.f32 %v1503_v39, %v3783_v51  ;;  %v368_v12 = vmul.f32 %v363_v53, %v3783_v51  ;;  %v369_v13 = vmul.f32 %v367_v54, %v3783_v51  ;;  %v391_v30 = vmul.f32 %v389_v1, %v3783_v51 }
 0x1f3   :  { %1378 = vmatpush2.bf16.msra.mxu0 %v2880_v56  ;;  %v3788_v56 = vsub.s32 3, %v3658_v7  ;;  %v1505_v31 = vadd.f32 %v1504_v3, %v1487_v60  ;;  %v370_v38 = vadd.f32 %v368_v12, %v310_v44  ;;  %v371_v39 = vadd.f32 %v369_v13, %v311_v52 }
 0x1f4   :  { %1379 = vmatprep.subr.bf16.mxu0 %v2873_v58  ;;  %v401_v58 = vrot.slane %v3724_v62, %v3766_v33  ;;  %v3816_v27 = vpop.permute.xlu1 %443 }
 0x1f5   :  { %v1527_v19 = vrot.slane %v3743_v11, %v3788_v56  ;;  %v449_v25 = vrot.slane %v3724_v62, %v3788_v56  ;;  %v433_v11 = vrot.slane %v423_v5, %v3766_v33 }
 0x1f6   :  { %v411_v20 = vrot.slane %v401_v58, %v3766_v33 }
 0x1f7   :  { %1380 = vmatpush2.bf16.msra.mxu0 %v2872_v59  ;;  %v3795_v59 = vsub.s32 7, %v3658_v7  ;;  %v459_v46 = vrot.slane %v449_v25, %v3788_v56 }
 0x1f8   :  { %1431 = vmatprep.subr.bf16.mxu0 %v2869_v61  ;;  %v385_v61 = vrot.slane %v375_v37, %v3667_v10  ;;  %v471_v37 = vrot.slane %v3731_v2, %v3788_v56 }
 0x1f9   :  { %v453_v26 = vrot.slane %v3724_v62, %v3795_v59  ;;  %v475_v62 = vrot.slane %v3731_v2, %v3795_v59  ;;  %v464_v3 = vmul.f32 %v459_v46, %v3816_v27 }
 0x1fa   :  { %v390_v22 = vmul.f32 %v385_v61, %v3783_v51  ;;  %v481_v44 = vrot.slane %v471_v37, %v3788_v56  ;;  %v3852_v37 = vld [vmem:[#allocation11] sm:$0xf] }
 0x1fb   :  { %v463_v53 = vrot.slane %v453_v26, %v3788_v56  ;;  %v485_v52 = vrot.slane %v475_v62, %v3788_v56 }
 0x1fc   :  { %v392_v54 = vadd.f32 %v390_v22, %v344_v4  ;;  %v486_v4 = vmul.f32 %v481_v44, %v3816_v27 }
 0x1fd   :  { %v465_v5 = vmul.f32 %v463_v53, %v3816_v27  ;;  %v487_v9 = vmul.f32 %v485_v52, %v3816_v27  ;;  %v540_v53 = vld [vmem:[#allocation10 + $0x150] sm:$0xff] }
 0x25b   :  { %v267_v35 = vpop.xlane.xlu0 %266 }
 0x25c   :  { %v268_v40 = vmul.f32 0.00390625, %v267_v35 }
 0x25e   :  { %v269_v14 = vadd.f32 1e-05, %v268_v40  ;;  %v1528_v40 = vmul.f32 %v1527_v19, %v3816_v27 }
 0x260   :  { %3309 = vrsqrt.f32 %v269_v14  ;;  %v393_v14 = vadd.f32 %v391_v30, %v345_v29 }
 0x263   :  { %v3820_v35 = vpop.permute.xlu0 %395 }
 0x264   :  { %v1516_v32 = vmul.f32 %v1515_v18, %v3820_v35  ;;  %v416_v41 = vmul.f32 %v411_v20, %v3820_v35  ;;  %v417_v45 = vmul.f32 %v415_v21, %v3820_v35  ;;  %v438_v16 = vmul.f32 %v433_v11, %v3820_v35 }
 0x265   :  { %v439_v2 = vmul.f32 %v437_v36, %v3820_v35 }
 0x266   :  { %v1517_v58 = vadd.f32 %v1516_v32, %v1505_v31  ;;  %v418_v61 = vadd.f32 %v416_v41, %v370_v38  ;;  %v419_v1 = vadd.f32 %v417_v45, %v371_v39  ;;  %v440_v13 = vadd.f32 %v438_v16, %v392_v54  ;;  %v549_v39 = vld [vmem:[#allocation10 + $0x198] sm:$0xff]  ;;  %v544_v54 = vld [vmem:[#allocation10 + $0x170] sm:$0xff] }
 0x267   :  { %v441_v12 = vadd.f32 %v439_v2, %v393_v14  ;;  %v553_v32 = vld [vmem:[#allocation10 + $0x1b8] sm:$0xff]  ;;  %v3534_v41 = vmov 4   ;;  %v2851_v52 = vcombine.high %v540_v53, %v544_v54 }
 0x268   :  { %v3838_v60 = vadd.f32 %v1528_v40, %v1517_v58  ;;  %v467_v20 = vadd.f32 %v465_v5, %v419_v1  ;;  %v466_v25 = vadd.f32 %v464_v3, %v418_v61  ;;  %v488_v22 = vadd.f32 %v486_v4, %v440_v13  ;;  %v541_v14 = vld [vmem:[#allocation10 + $0x158] sm:$0xff]  ;;  %v2935_v61 = vld [vmem:[#allocation13] ss:$0 sm:$0xff] }
 0x269   :  { %v489_v26 = vadd.f32 %v487_v9, %v441_v12  ;;  %v1491_v40 = vrot.slane %v3852_v37, %v3661_v8  ;;  %v2861_v46 = vcombine.high %v549_v39, %v553_v32  ;;  %v545_v58 = vld [vmem:[#allocation10 + $0x178] sm:$0xff]  ;;  %v2860_v2 = vcombine.low %v549_v39, %v553_v32  ;;  %v524_v9 = vld [vmem:[#allocation10 + $0xd0] sm:$0xff] }
 0x26a   :  { %1558 = vperm.xlu1 %3093, %v3838_v60   ;;  %1588 = vperm.xlu0 %3094, %v3838_v60   ;;  %v1509_v1 = vrot.slane %v3852_v37, %v3667_v10  ;;  %v2853_v3 = vcombine.high %v541_v14, %v545_v58  ;;  %v2843_v4 = vcombine.high %v532_v42, %v536_v43 }
 0x26b   :  { %v1492_v44 = vmul.f32 %v1491_v40, %v3749_v17  ;;  %v2852_v17 = vcombine.low %v541_v14, %v545_v58  ;;  %v1521_v13 = vrot.slane %v3852_v37, %v3766_v33  ;;  %v513_v14 = vld [vmem:[#allocation10 + $0x78] sm:$0xff] }
 0x26c   :  { %v1510_v12 = vmul.f32 %v1509_v1, %v3783_v51  ;;  %v501_v1 = vld [vmem:[#allocation10 + $0x18] sm:$0xff] }
 0x26d   :  { %v3310_v18 = vpop.eup %3309  ;;  %v1499_v5 = vadd.f32 %v2935_v61, %v1492_v44  ;;  %v504_v61 = vld [vmem:[#allocation10 + $0x30] sm:$0xff] }
 0x26e   :  { %v272_v19 = vmul.f32 %v3310_v18, %v3695_v48  ;;  %v271_v21 = vmul.f32 %v3310_v18, %v3692_v47  ;;  %3095 = vset.pattern.permute.xlu1 %v3531_v23  ;;  %3103 = vset.pattern.permute.xlu0 %v3531_v23  ;;  %v548_v47 = vld [vmem:[#allocation10 + $0x190] sm:$0xff]  ;;  %v2845_v18 = vcombine.high %v533_v49, %v537_v50 }
 0x26f   :  { %1617 = vperm.xlu1 %3095, %v3838_v60   ;;  %v552_v23 = vld [vmem:[#allocation10 + $0x1b0] sm:$0xff]  ;;  %v1511_v51 = vadd.f32 %v1510_v12, %v1499_v5  ;;  %v625_v5 = vld [vmem:[#allocation10 + $0x3f8] sm:$0xff] }
 0x270   :  { %v491_v29 = vmul.f32 %v467_v20, %v272_v19  ;;  %v490_v30 = vmul.f32 %v466_v25, %v271_v21  ;;  %v2859_v45 = vcombine.high %v548_v47, %v552_v23  ;;  %v2858_v16 = vcombine.low %v548_v47, %v552_v23  ;;  %v528_v19 = vld [vmem:[#allocation10 + $0xf0] sm:$0xff]  ;;  %v525_v20 = vld [vmem:[#allocation10 + $0xd8] sm:$0xff] }
 0x271   :  { %v529_v21 = vld [vmem:[#allocation10 + $0xf8] sm:$0xff]  ;;  %v2842_v25 = vcombine.low %v532_v42, %v536_v43  ;;  %v2834_v23 = vcombine.low %v524_v9, %v528_v19 }
 0x272   :  { %v493_v31 = vadd.f32 %v491_v29, %v489_v26  ;;  %v492_v11 = vadd.f32 %v490_v30, %v488_v22  ;;  %v2844_v26 = vcombine.low %v533_v49, %v537_v50  ;;  %v3536_v29 = vmov 6   ;;  %v517_v47 = vld [vmem:[#allocation10 + $0x98] sm:$0xff]  ;;  %v620_v50 = vld [vmem:[#allocation10 + $0x3d0] sm:$0xff] }
 0x273   :  { %3096 = vset.pattern.permute.xlu1 %v3533_v28  ;;  %v2835_v22 = vcombine.high %v524_v9, %v528_v19  ;;  %v2837_v30 = vcombine.high %v525_v20, %v529_v21  ;;  %v2836_v39 = vcombine.low %v525_v20, %v529_v21  ;;  %v613_v19 = vld [vmem:[#allocation10 + $0x398] sm:$0xff] }
 0x274   :  { %v495_v36 = vmax.f32 %v493_v31, 0.0  ;;  %v494_v48 = vmax.f32 %v492_v11, 0.0  ;;  %1646 = vperm.xlu1 %3096, %v3838_v60   ;;  %v516_v31 = vld [vmem:[#allocation10 + $0x90] sm:$0xff]  ;;  %v1522_v11 = vmul.f32 %v1521_v13, %v3820_v35  ;;  %v617_v20 = vld [vmem:[#allocation10 + $0x3b8] sm:$0xff] }
 0x275   :  { %v612_v13 = vld [vmem:[#allocation10 + $0x390] sm:$0xff] }
 0x276   :  { %v497_v62 = vpack.c.bf16 %v495_v36, %v495_v36  ;;  %v3855_v38 = vpack.c.bf16 %v494_v48, %v494_v48  ;;  %v1533_v36 = vrot.slane %v3852_v37, %v3788_v56  ;;  %v520_v48 = vld [vmem:[#allocation10 + $0xb0] sm:$0xff] }
 0x277   :  { %v2827_v32 = vcombine.high %v516_v31, %v520_v48  ;;  %v508_v37 = vld [vmem:[#allocation10 + $0x50] sm:$0xff]  ;;  %v2826_v58 = vcombine.low %v516_v31, %v520_v48  ;;  %v605_v31 = vld [vmem:[#allocation10 + $0x358] sm:$0xff] }
 0x278   :  { %1340 = vmatprep.mubr.bf16.mxu1 %v497_v62  ;;  %1381 = vmatprep.mubr.bf16.mxu0 %v497_v62  ;;  %v1534_v35 = vmul.f32 %v1533_v36, %v3816_v27  ;;  %v500_v27 = vld [vmem:[#allocation10 + $0x10] sm:$0xff]  ;;  %v2924_v36 = vcombine.low %v613_v19, %v617_v20 }
 0x279   :  { %3097 = vset.pattern.permute.xlu1 %v3534_v41  ;;  %1341 = vmatmul.mubr.bf16.vlgmr.msra.gmra.mxu1 %v3855_v38  ;;  %v2811_v43 = vcombine.high %v500_v27, %v504_v61 }
 0x27a   :  { %1675 = vperm.xlu1 %3097, %v3838_v60   ;;  %1382 = vmatmul.mubr.bf16.vlgmr.msra.gmra.mxu0 %v3855_v38 }
 0x27b   :  { %1391 = vmatpush1.bf16.msra.mxu1 %v2866_v55  ;;  %1432 = vmatpush1.bf16.msra.mxu0 %v2868_v57  ;;  %v3535_v55 = vmov 5   ;;  %v2850_v57 = vcombine.low %v540_v53, %v544_v54  ;;  %v512_v53 = vld [vmem:[#allocation10 + $0x70] sm:$0xff]  ;;  %v509_v54 = vld [vmem:[#allocation10 + $0x58] sm:$0xff] }
 0x27c   :  { %1422 = vmatprep.mubr.bf16.mxu1 %v497_v62  ;;  %1463 = vmatprep.mubr.bf16.mxu0 %v497_v62  ;;  %v521_v62 = vld [vmem:[#allocation10 + $0xb8] sm:$0xff]  ;;  %v2820_v42 = vcombine.low %v509_v54, %v513_v14 }
 0x27d   :  { %1392 = vmatprep.subr.bf16.mxu1 %v2859_v45  ;;  %1433 = vmatprep.subr.bf16.mxu0 %v2861_v46  ;;  %v2829_v40 = vcombine.high %v517_v47, %v521_v62  ;;  %v1523_v45 = vadd.f32 %v1522_v11, %v1511_v51  ;;  %v3537_v46 = vmov 7   ;;  %v609_v51 = vld [vmem:[#allocation10 + $0x378] sm:$0xff] }
 0x27e   :  { %3098 = vset.pattern.permute.xlu1 %v3535_v55 }
 0x27f   :  { %1393 = vmatpush1.bf16.msra.mxu1 %v2858_v16  ;;  %1434 = vmatpush1.bf16.msra.mxu0 %v2860_v2  ;;  %v2828_v16 = vcombine.low %v517_v47, %v521_v62  ;;  %v2819_v2 = vcombine.high %v508_v37, %v512_v53  ;;  %v3885_v44 = vadd.f32 %v1534_v35, %v1523_v45  ;;  %v596_v62 = vld [vmem:[#allocation10 + $0x310] sm:$0xff] }
 0x280   :  { %1704 = vperm.xlu1 %3098, %v3838_v60   ;;  %1394 = vmatprep.subr.bf16.mxu1 %v2851_v52  ;;  %v2821_v52 = vcombine.high %v509_v54, %v513_v14  ;;  %v2917_v47 = vcombine.high %v605_v31, %v609_v51  ;;  %v2916_v45 = vcombine.low %v605_v31, %v609_v51  ;;  %v589_v54 = vld [vmem:[#allocation10 + $0x2d8] sm:$0xff]  ;;  %v1537_v31 = vand.u32 127, %v176_v6  ;;  %v626_v51 = vld [vmem:[%s4087_s9] sm:$0xff] }
 0x281   :  { %1435 = vmatprep.subr.bf16.mxu0 %v2853_v3  ;;  %v505_v3 = vld [vmem:[#allocation10 + $0x38] sm:$0xff] }
 0x282   :  { %v2813_v49 = vcombine.high %v501_v1, %v505_v3  ;;  %v593_v14 = vld [vmem:[#allocation10 + $0x2f8] sm:$0xff]  ;;  %vm1538_vm2 = vcmp.lt.s32.totalorder %v1537_v31, 81 }
 0x283   :  { %1395 = vmatpush1.bf16.msra.mxu1 %v2850_v57  ;;  %1436 = vmatpush1.bf16.msra.mxu0 %v2852_v17  ;;  %v624_v57 = vld [vmem:[#allocation10 + $0x3f0] sm:$0xff]  ;;  %v621_v17 = vld [vmem:[#allocation10 + $0x3d8] sm:$0xff] }
 0x284   :  { %3099 = vset.pattern.permute.xlu1 %v3536_v29  ;;  %1396 = vmatprep.subr.bf16.mxu1 %v2843_v4  ;;  %v2812_v4 = vcombine.low %v501_v1, %v505_v3  ;;  %v2931_v9 = vcombine.high %v620_v50, %v624_v57  ;;  %v2933_v12 = vcombine.high %v621_v17, %v625_v5  ;;  %v581_v1 = vld [vmem:[#allocation10 + $0x298] sm:$0xff] }
 0x285   :  { %1733 = vperm.xlu1 %3099, %v3838_v60   ;;  %1437 = vmatprep.subr.bf16.mxu0 %v2845_v18  ;;  %v616_v18 = vld [vmem:[#allocation10 + $0x3b0] sm:$0xff]  ;;  %v2930_v21 = vcombine.low %v620_v50, %v624_v57  ;;  %v585_v3 = vld [vmem:[#allocation10 + $0x2b8] sm:$0xff] }
 0x286   :  { %v2922_v11 = vcombine.low %v612_v13, %v616_v18  ;;  %v572_v50 = vld [vmem:[#allocation10 + $0x250] sm:$0xff] }
 0x287   :  { %1397 = vmatpush1.bf16.msra.mxu1 %v2842_v25  ;;  %1438 = vmatpush1.bf16.msra.mxu0 %v2844_v26  ;;  %v2932_v25 = vcombine.low %v621_v17, %v625_v5  ;;  %v2925_v26 = vcombine.high %v613_v19, %v617_v20  ;;  %v576_v57 = vld [vmem:[#allocation10 + $0x270] sm:$0xff]  ;;  %v573_v17 = vld [vmem:[#allocation10 + $0x258] sm:$0xff] }
 0x288   :  { %1398 = vmatprep.subr.bf16.mxu1 %v2835_v22  ;;  %1439 = vmatprep.subr.bf16.mxu0 %v2837_v30  ;;  %v604_v22 = vld [vmem:[#allocation10 + $0x350] sm:$0xff]  ;;  %v577_v5 = vld [vmem:[#allocation10 + $0x278] sm:$0xff] }
 0x289   :  { %3100 = vset.pattern.permute.xlu1 %v3537_v46  ;;  %v608_v30 = vld [vmem:[#allocation10 + $0x370] sm:$0xff]  ;;  %v565_v19 = vld [vmem:[#allocation10 + $0x218] sm:$0xff] }
 0x28a   :  { %1762 = vperm.xlu1 %3100, %v3838_v60   ;;  %v2818_v60 = vcombine.low %v508_v37, %v512_v53  ;;  %v2915_v48 = vcombine.high %v604_v22, %v608_v30  ;;  %v588_v37 = vld [vmem:[#allocation10 + $0x2d0] sm:$0xff]  ;;  %v569_v20 = vld [vmem:[#allocation10 + $0x238] sm:$0xff] }
 0x28b   :  { %1399 = vmatpush1.bf16.msra.mxu1 %v2834_v23  ;;  %1440 = vmatpush1.bf16.msra.mxu0 %v2836_v39  ;;  %v600_v23 = vld [vmem:[#allocation10 + $0x330] sm:$0xff]  ;;  %v597_v39 = vld [vmem:[#allocation10 + $0x318] sm:$0xff] }
 0x28c   :  { %1400 = vmatprep.subr.bf16.mxu1 %v2827_v32  ;;  %1441 = vmatprep.subr.bf16.mxu0 %v2829_v40  ;;  %v601_v32 = vld [vmem:[#allocation10 + $0x338] sm:$0xff]  ;;  %v2914_v40 = vcombine.low %v604_v22, %v608_v30  ;;  %v592_v53 = vld [vmem:[#allocation10 + $0x2f0] sm:$0xff]  ;;  %v2876_v30 = vcombine.low %v565_v19, %v569_v20 }
 0x28d   :  { %v2909_v35 = vcombine.high %v597_v39, %v601_v32 }
 0x28e   :  { %3101 = vset.pattern.permute.xlu1 %v3530_v0  ;;  %v2810_v0 = vcombine.low %v500_v27, %v504_v61  ;;  %v580_v27 = vld [vmem:[#allocation10 + $0x290] sm:$0xff] }
 0x28f   :  { %1564 = vperm.xlu1 %3101, %v3885_v44   ;;  %1401 = vmatpush1.bf16.msra.mxu1 %v2826_v58  ;;  %v2906_v58 = vcombine.low %v596_v62, %v600_v23  ;;  %v584_v61 = vld [vmem:[#allocation10 + $0x2b0] sm:$0xff] }
 0x290   :  { %1442 = vmatpush1.bf16.msra.mxu0 %v2828_v16  ;;  %1402 = vmatprep.subr.bf16.mxu1 %v2819_v2  ;;  %v2908_v16 = vcombine.low %v597_v39, %v601_v32  ;;  %v2899_v2 = vcombine.high %v588_v37, %v592_v53 }
 0x291   :  { %1443 = vmatprep.subr.bf16.mxu0 %v2821_v52  ;;  %v2901_v52 = vcombine.high %v589_v54, %v593_v14 }
 0x293   :  { %3102 = vset.pattern.permute.xlu1 %v3532_v24  ;;  %1403 = vmatpush1.bf16.msra.mxu1 %v2818_v60  ;;  %v2923_v24 = vcombine.high %v612_v13, %v616_v18  ;;  %v2898_v60 = vcombine.low %v588_v37, %v592_v53  ;;  %v564_v13 = vld [vmem:[#allocation10 + $0x210] sm:$0xff] }
 0x294   :  { %1444 = vmatpush1.bf16.msra.mxu0 %v2820_v42  ;;  %1593 = vperm.xlu1 %3102, %v3885_v44   ;;  %v2900_v42 = vcombine.low %v589_v54, %v593_v14  ;;  %v568_v18 = vld [vmem:[#allocation10 + $0x230] sm:$0xff]  ;;  %v635_v14 = vrot.slane %v626_v51, %v3667_v10 }
 0x295   :  { %1404 = vmatprep.subr.bf16.mxu1 %v2811_v43  ;;  %1445 = vmatprep.subr.bf16.mxu0 %v2813_v49  ;;  %v2891_v43 = vcombine.high %v580_v27, %v584_v61  ;;  %v2893_v49 = vcombine.high %v581_v1, %v585_v3  ;;  %v2874_v22 = vcombine.low %v564_v13, %v568_v18 }
 0x297   :  { %1405 = vmatpush1.bf16.msra.mxu1 %v2810_v0  ;;  %v2890_v0 = vcombine.low %v580_v27, %v584_v61  ;;  %v647_v61 = vrot.slane %v626_v51, %v3727_v63 }
 0x298   :  { %1446 = vmatpush1.bf16.msra.mxu0 %v2812_v4  ;;  %1406 = vmatprep.subr.bf16.mxu1 %v2931_v9  ;;  %v2892_v4 = vcombine.low %v581_v1, %v585_v3  ;;  %v2883_v9 = vcombine.high %v572_v50, %v576_v57  ;;  %v655_v1 = vrot.slane %v626_v51, %v3769_v34 }
 0x299   :  { %1447 = vmatprep.subr.bf16.mxu0 %v2933_v12  ;;  %3104 = vset.pattern.permute.xlu1 %v3533_v28  ;;  %v2907_v28 = vcombine.high %v596_v62, %v600_v23  ;;  %v2885_v12 = vcombine.high %v573_v17, %v577_v5 }
 0x29b   :  { %1407 = vmatpush2.bf16.msra.mxu1 %v2930_v21  ;;  %v2882_v21 = vcombine.low %v572_v50, %v576_v57 }
 0x29c   :  { %1448 = vmatpush2.bf16.msra.mxu0 %v2932_v25  ;;  %1408 = vmatprep.subr.bf16.mxu1 %v2923_v24  ;;  %v2884_v25 = vcombine.low %v573_v17, %v577_v5  ;;  %v2875_v24 = vcombine.high %v564_v13, %v568_v18  ;;  %v659_v5 = vrot.slane %v626_v51, %v3795_v59 }
 0x29d   :  { %1449 = vmatprep.subr.bf16.mxu0 %v2925_v26  ;;  %v2877_v26 = vcombine.high %v565_v19, %v569_v20 }
 0x29f   :  { %1409 = vmatpush2.bf16.msra.mxu1 %v2922_v11  ;;  %v631_v11 = vrot.slane %v626_v51, %v3661_v8 }
 0x2a0   :  { %1450 = vmatpush2.bf16.msra.mxu0 %v2924_v36  ;;  %1410 = vmatprep.subr.bf16.mxu1 %v2915_v48  ;;  %v639_v36 = vrot.slane %v626_v51, %v3766_v33  ;;  %v3538_v48 = vmov 0.0  }
 0x2a1   :  { %1451 = vmatprep.subr.bf16.mxu0 %v2917_v47  ;;  %v3900_v47 = vsel %vm1538_vm2, 1.0, %v3538_v48 }
 0x2a3   :  { %1411 = vmatpush2.bf16.msra.mxu1 %v2914_v40 }
 0x2a4   :  { %1452 = vmatpush2.bf16.msra.mxu0 %v2916_v45  ;;  %1412 = vmatprep.subr.bf16.mxu1 %v2907_v28 }
 0x2a5   :  { %1453 = vmatprep.subr.bf16.mxu0 %v2909_v35 }
 0x2a7   :  { %1413 = vmatpush2.bf16.msra.mxu1 %v2906_v58 }
 0x2a8   :  { %1454 = vmatpush2.bf16.msra.mxu0 %v2908_v16  ;;  %1414 = vmatprep.subr.bf16.mxu1 %v2899_v2  ;;  %v643_v16 = vrot.slane %v626_v51, %v3788_v56 }
 0x2a9   :  { %1455 = vmatprep.subr.bf16.mxu0 %v2901_v52 }
 0x2ab   :  { %1415 = vmatpush2.bf16.msra.mxu1 %v2898_v60 }
 0x2ac   :  { %1456 = vmatpush2.bf16.msra.mxu0 %v2900_v42  ;;  %1416 = vmatprep.subr.bf16.mxu1 %v2891_v43  ;;  %v651_v42 = vrot.slane %v626_v51, %v3747_v15 }
 0x2ad   :  { %1457 = vmatprep.subr.bf16.mxu0 %v2893_v49 }
 0x2af   :  { %1417 = vmatpush2.bf16.msra.mxu1 %v2890_v0 }
 0x2b0   :  { %1458 = vmatpush2.bf16.msra.mxu0 %v2892_v4  ;;  %1418 = vmatprep.subr.bf16.mxu1 %v2883_v9 }
 0x2b1   :  { %1459 = vmatprep.subr.bf16.mxu0 %v2885_v12 }
 0x2b3   :  { %1419 = vmatpush2.bf16.msra.mxu1 %v2882_v21 }
 0x2b4   :  { %1460 = vmatpush2.bf16.msra.mxu0 %v2884_v25  ;;  %1420 = vmatprep.subr.bf16.mxu1 %v2875_v24 }
 0x2b5   :  { %1461 = vmatprep.subr.bf16.mxu0 %v2877_v26 }
 0x2b7   :  { %1421 = vmatpush2.bf16.msra.mxu1 %v2874_v22 }
 0x2b8   :  { %1462 = vmatpush2.bf16.msra.mxu0 %v2876_v30 }
 0x2ba   :  { %1423 = vmatmul.mubr.bf16.vlgmr.msra.gmra.mxu1 %v3855_v38 }
 0x2bb   :  { %1464 = vmatmul.mubr.bf16.vlgmr.msra.gmra.mxu0 %v3855_v38 }
 0x2e5   :  { %v3952_v21 = vpop.permute.xlu1 %1558 }
 0x2ea   :  { %v3954_v25 = vpop.permute.xlu1 %1617 }
 0x2ef   :  { %v3957_v24 = vpop.permute.xlu1 %1646 }
 0x2f5   :  { %v3960_v26 = vpop.permute.xlu1 %1675 }
 0x2fb   :  { %v3962_v22 = vpop.permute.xlu1 %1704 }
 0x300   :  { %v3964_v30 = vpop.permute.xlu1 %1733 }
 0x305   :  { %v3966_v31 = vpop.permute.xlu1 %1762 }
 0x30a   :  { %v3968_v51 = vpop.permute.xlu1 %1564 }
 0x339   :  { %v1342_v62 = vpop.f32.mrf.mxu1 }
 0x33a   :  { %v3902_v23 = vadd.f32 %v1342_v62, %v631_v11  ;;  %v1383_v39 = vpop.f32.mrf.mxu0  ;;  %v3970_v11 = vpop.permute.xlu1 %1593 }
 0x33b   :  { %v3904_v32 = vadd.f32 %v1383_v39, %v639_v36  ;;  %v1344_v38 = vpop.f32.mrf.mxu1  ;;  %v3972_v36 = vpop.permute.xlu0 %1588 }
 0x33c   :  { %v1385_v6 = vpop.f32.mrf.mxu0  ;;  %v1541_v40 = vmul.f32 %v3900_v47, %v3902_v23  ;;  %v3917_v58 = vadd.f32 %v1344_v38, %v635_v14 }
 0x33d   :  { %v1346_v45 = vpop.f32.mrf.mxu1  ;;  %v1601_v28 = vmul.f32 %v3900_v47, %v3904_v32  ;;  %v3920_v2 = vadd.f32 %v1385_v6, %v643_v16 }
 0x33e   :  { %v1387_v35 = vpop.f32.mrf.mxu0  ;;  %v1542_v33 = vsel %vm251_vm1, %v1541_v40, 0.0  ;;  %v1572_v52 = vmul.f32 %v3900_v47, %v3917_v58 }
 0x33f   :  { %v1602_v37 = vsel %vm251_vm1, %v1601_v28, 0.0  ;;  %v1347_v53 = vpop.f32.mrf.mxu1  ;;  %1543 = vadd.xlane.f32.xlu1 %v1542_v33 }
 0x340   :  { %v1388_v54 = vpop.f32.mrf.mxu0  ;;  %1603 = vadd.xlane.f32.xlu0 %v1602_v37  ;;  %v1573_v27 = vsel %vm251_vm1, %v1572_v52, 0.0 }
 0x350   :  { %1651 = vperm.xlu1 %3104, %v3885_v44  }
 0x354   :  { %3105 = vset.pattern.permute.xlu1 %v3534_v41  ;;  %v1630_v41 = vmul.f32 %v3900_v47, %v3920_v2 }
 0x356   :  { %1622 = vperm.xlu0 %3103, %v3885_v44  }
 0x35a   :  { %3106 = vset.pattern.permute.xlu0 %v3535_v55  ;;  %v1631_v55 = vsel %vm251_vm1, %v1630_v41, 0.0 }
 0x374   :  { %1574 = vadd.xlane.f32.xlu1 %v1573_v27 }
 0x378   :  { %1632 = vadd.xlane.f32.xlu1 %v1631_v55 }
 0x37a   :  { %v1424_v3 = vpop.f32.mrf.mxu1 }
 0x37b   :  { %v3930_v56 = vadd.f32 %v1424_v3, %v647_v61  ;;  %v1465_v60 = vpop.f32.mrf.mxu0 }
 0x37c   :  { %v3933_v43 = vadd.f32 %v1465_v60, %v655_v1  ;;  %v1426_v49 = vpop.f32.mrf.mxu1 }
 0x37d   :  { %v1467_v50 = vpop.f32.mrf.mxu0  ;;  %v1659_v57 = vmul.f32 %v3900_v47, %v3930_v56  ;;  %v3937_v63 = vadd.f32 %v1426_v49, %v651_v42 }
 0x37e   :  { %v1428_v17 = vpop.f32.mrf.mxu1  ;;  %v1717_v4 = vmul.f32 %v3900_v47, %v3933_v43  ;;  %v3943_v12 = vadd.f32 %v1467_v50, %v659_v5 }
 0x37f   :  { %v1469_v34 = vpop.f32.mrf.mxu0  ;;  %v1660_v0 = vsel %vm251_vm1, %v1659_v57, 0.0  ;;  %v1688_v18 = vmul.f32 %v3900_v47, %v3937_v63 }
 0x380   :  { %v1429_v9 = vpop.f32.mrf.mxu1  ;;  %1661 = vadd.xlane.f32.xlu1 %v1660_v0  ;;  %v1718_v13 = vsel %vm251_vm1, %v1717_v4, 0.0  ;;  %v1746_v59 = vmul.f32 %v3900_v47, %v3943_v12 }
 0x381   :  { %v1470_v15 = vpop.f32.mrf.mxu0  ;;  %v1689_v19 = vsel %vm251_vm1, %v1688_v18, 0.0  ;;  %v3116_v18 = vld [vmem:[#allocation14 + $0x70] ss:$8 sps:$4 sm:$0xff]  }
 0x382   :  { %v1747_v20 = vsel %vm251_vm1, %v1746_v59, 0.0  ;;  %v3118_v15 = vld [vmem:[#allocation14 + $0x74] ss:$8 sps:$4 sm:$0xff]  }
 0x383   :  { %2614 = vmatprep.subr.bf16.mxu1 %v3118_v15  ;;  %v3161_v15 = vld [vmem:[#allocation14 + $0x100] ss:$8 sps:$4 sm:$0xff]  }
 0x384   :  { %1719 = vadd.xlane.f32.xlu1 %v1718_v13  ;;  %2615 = vmatpush1.bf16.msra.mxu1 %v3116_v18  ;;  %v3164_v18 = vld [vmem:[#allocation14 + $0xf0] ss:$8 sps:$4 sm:$0xff]  }
 0x388   :  { %1690 = vadd.xlane.f32.xlu1 %v1689_v19 }
 0x38c   :  { %1748 = vadd.xlane.f32.xlu1 %v1747_v20  ;;  %v3121_v20 = vld [vmem:[#allocation14 + $0x174] ss:$8 sps:$4 sm:$0xff]  }
 0x38d   :  { %2655 = vmatprep.subr.bf16.mxu0 %v3121_v20  ;;  %v3172_v20 = vld [vmem:[#allocation14 + $0xe4] ss:$8 sps:$4 sm:$0xff]  }
 0x39d   :  { %1680 = vperm.xlu1 %3105, %v3885_v44  }
 0x3a1   :  { %3107 = vset.pattern.permute.xlu1 %v3536_v29 }
 0x3c8   :  { %v1544_v48 = vpop.xlane.xlu1 %1543 }
 0x3c9   :  { %v1604_v62 = vpop.xlane.xlu0 %1603  ;;  %v1545_v39 = vmul.f32 0.012345679, %v1544_v48  ;;  %v3119_v48 = vld [vmem:[#allocation14 + $0x170] ss:$8 sps:$4 sm:$0xff]  }
 0x3ca   :  { %v1605_v38 = vmul.f32 0.012345679, %v1604_v62  ;;  %2656 = vmatpush1.bf16.msra.mxu0 %v3119_v48  ;;  %v3170_v48 = vld [vmem:[#allocation14 + $0xe0] ss:$8 sps:$4 sm:$0xff]  }
 0x3cb   :  { %v1546_v29 = vsub.f32 %v3902_v23, %v1545_v39  ;;  %v3124_v39 = vld [vmem:[#allocation14 + $0x64] ss:$8 sps:$4 sm:$0xff]  }
 0x3cc   :  { %v1606_v6 = vsub.f32 %v3904_v32, %v1605_v38  ;;  %v3988_v23 = vpop.permute.xlu1 %1651  ;;  %v3122_v38 = vld [vmem:[#allocation14 + $0x60] ss:$8 sps:$4 sm:$0xff]   ;;  %2616 = vmatprep.subr.bf16.mxu1 %v3124_v39  ;;  %v3178_v39 = vld [vmem:[#allocation14 + $0xd4] ss:$8 sps:$4 sm:$0xff]  }
 0x3cd   :  { %v3977_v40 = vmul.f32 %v3900_v47, %v1546_v29  ;;  %2617 = vmatpush1.bf16.msra.mxu1 %v3122_v38  ;;  %v3181_v38 = vld [vmem:[#allocation14 + $0x1d4] ss:$8 sps:$4 sm:$0xff]  }
 0x3ce   :  { %v3980_v45 = vmul.f32 %v3900_v47, %v1606_v6 }
 0x3cf   :  { %v1548_v28 = vmul.f32 %v3977_v40, %v3977_v40 }
 0x3d0   :  { %v1608_v33 = vmul.f32 %v3980_v45, %v3980_v45 }
 0x3d1   :  { %v1549_v35 = vsel %vm251_vm1, %v1548_v28, 0.0  ;;  %v3127_v28 = vld [vmem:[#allocation14 + $0x164] ss:$8 sps:$4 sm:$0xff]  }
 0x3d2   :  { %1550 = vadd.xlane.f32.xlu1 %v1549_v35  ;;  %v1609_v37 = vsel %vm251_vm1, %v1608_v33, 0.0  ;;  %v3125_v35 = vld [vmem:[#allocation14 + $0x160] ss:$8 sps:$4 sm:$0xff]   ;;  %2657 = vmatprep.subr.bf16.mxu0 %v3127_v28  ;;  %v3130_v33 = vld [vmem:[#allocation14 + $0x54] ss:$8 sps:$4 sm:$0xff]  }
 0x3d3   :  { %2658 = vmatpush1.bf16.msra.mxu0 %v3125_v35  ;;  %2618 = vmatprep.subr.bf16.mxu1 %v3130_v33  ;;  %v3184_v28 = vld [vmem:[#allocation14 + $0xc4] ss:$8 sps:$4 sm:$0xff]   ;;  %v3182_v35 = vld [vmem:[#allocation14 + $0xc0] ss:$8 sps:$4 sm:$0xff]   ;;  %v3190_v33 = vld [vmem:[#allocation14 + $0xb4] ss:$8 sps:$4 sm:$0xff]  }
 0x3d6   :  { %1610 = vadd.xlane.f32.xlu1 %v1609_v37  ;;  %v3128_v37 = vld [vmem:[#allocation14 + $0x50] ss:$8 sps:$4 sm:$0xff]  }
 0x3d7   :  { %2619 = vmatpush1.bf16.msra.mxu1 %v3128_v37  ;;  %v3188_v37 = vld [vmem:[#allocation14 + $0xb0] ss:$8 sps:$4 sm:$0xff]  }
 0x3fd   :  { %v1575_v32 = vpop.xlane.xlu1 %1574 }
 0x3fe   :  { %v1576_v53 = vmul.f32 0.012345679, %v1575_v32 }
 0x400   :  { %v1577_v54 = vsub.f32 %v3917_v58, %v1576_v53  ;;  %v3133_v53 = vld [vmem:[#allocation14 + $0x154] ss:$8 sps:$4 sm:$0xff]  }
 0x401   :  { %v1633_v14 = vpop.xlane.xlu1 %1632  ;;  %2659 = vmatprep.subr.bf16.mxu0 %v3133_v53  ;;  %v3191_v53 = vld [vmem:[#allocation14 + $0x1b0] ss:$8 sps:$4 sm:$0xff]  }
 0x402   :  { %v1634_v16 = vmul.f32 0.012345679, %v1633_v14  ;;  %v3992_v52 = vmul.f32 %v3900_v47, %v1577_v54  ;;  %v3131_v54 = vld [vmem:[#allocation14 + $0x150] ss:$8 sps:$4 sm:$0xff]   ;;  %v3136_v14 = vld [vmem:[#allocation14 + $0x44] ss:$8 sps:$4 sm:$0xff]  }
 0x403   :  { %2660 = vmatpush1.bf16.msra.mxu0 %v3131_v54  ;;  %2620 = vmatprep.subr.bf16.mxu1 %v3136_v14  ;;  %v3194_v54 = vld [vmem:[#allocation14 + $0xa0] ss:$8 sps:$4 sm:$0xff]   ;;  %v3196_v14 = vld [vmem:[#allocation14 + $0xa4] ss:$8 sps:$4 sm:$0xff]  }
 0x404   :  { %v1635_v27 = vsub.f32 %v3920_v2, %v1634_v16  ;;  %v1579_v41 = vmul.f32 %v3992_v52, %v3992_v52  ;;  %v3134_v16 = vld [vmem:[#allocation14 + $0x40] ss:$8 sps:$4 sm:$0xff]  }
 0x405   :  { %2621 = vmatpush1.bf16.msra.mxu1 %v3134_v16  ;;  %v3199_v16 = vld [vmem:[#allocation14 + $0x1a4] ss:$8 sps:$4 sm:$0xff]  }
 0x406   :  { %v1580_v61 = vsel %vm251_vm1, %v1579_v41, 0.0  ;;  %v3999_v55 = vmul.f32 %v3900_v47, %v1635_v27  ;;  %v3139_v27 = vld [vmem:[#allocation14 + $0x144] ss:$8 sps:$4 sm:$0xff]   ;;  %v3137_v41 = vld [vmem:[#allocation14 + $0x140] ss:$8 sps:$4 sm:$0xff]  }
 0x407   :  { %1581 = vadd.xlane.f32.xlu1 %v1580_v61  ;;  %2661 = vmatprep.subr.bf16.mxu0 %v3139_v27  ;;  %v3142_v61 = vld [vmem:[#allocation14 + $0x34] ss:$8 sps:$4 sm:$0xff]   ;;  %v3197_v27 = vld [vmem:[#allocation14 + $0x1a0] ss:$8 sps:$4 sm:$0xff]  }
 0x408   :  { %v1637_v1 = vmul.f32 %v3999_v55, %v3999_v55  ;;  %2662 = vmatpush1.bf16.msra.mxu0 %v3137_v41  ;;  %2622 = vmatprep.subr.bf16.mxu1 %v3142_v61  ;;  %v3202_v41 = vld [vmem:[#allocation14 + $0x94] ss:$8 sps:$4 sm:$0xff]  }
 0x409   :  { %v1662_v58 = vpop.xlane.xlu1 %1661  ;;  %v3205_v61 = vld [vmem:[#allocation14 + $0x194] ss:$8 sps:$4 sm:$0xff]  }
 0x40a   :  { %v1663_v3 = vmul.f32 0.012345679, %v1662_v58  ;;  %v1638_v60 = vsel %vm251_vm1, %v1637_v1, 0.0  ;;  %v3140_v1 = vld [vmem:[#allocation14 + $0x30] ss:$8 sps:$4 sm:$0xff]  }
 0x40b   :  { %1639 = vadd.xlane.f32.xlu0 %v1638_v60  ;;  %v3145_v58 = vld [vmem:[#allocation14 + $0x134] ss:$8 sps:$4 sm:$0xff]   ;;  %2623 = vmatpush1.bf16.msra.mxu1 %v3140_v1  ;;  %v3148_v60 = vld [vmem:[#allocation14 + $0x24] ss:$8 sps:$4 sm:$0xff]   ;;  %v3200_v1 = vld [vmem:[#allocation14 + $0x90] ss:$8 sps:$4 sm:$0xff]  }
 0x40c   :  { %v1664_v42 = vsub.f32 %v3930_v56, %v1663_v3  ;;  %v3143_v3 = vld [vmem:[#allocation14 + $0x130] ss:$8 sps:$4 sm:$0xff]   ;;  %2663 = vmatprep.subr.bf16.mxu0 %v3145_v58  ;;  %2624 = vmatprep.subr.bf16.mxu1 %v3148_v60  ;;  %v3208_v58 = vld [vmem:[#allocation14 + $0x84] ss:$8 sps:$4 sm:$0xff]  }
 0x40d   :  { %v1720_v2 = vpop.xlane.xlu1 %1719  ;;  %2664 = vmatpush1.bf16.msra.mxu0 %v3143_v3  ;;  %v3203_v3 = vld [vmem:[#allocation14 + $0x190] ss:$8 sps:$4 sm:$0xff]   ;;  %v3211_v60 = vld [vmem:[#allocation14 + $0x184] ss:$8 sps:$4 sm:$0xff]  }
 0x40e   :  { %v1721_v49 = vmul.f32 0.012345679, %v1720_v2  ;;  %v4006_v50 = vmul.f32 %v3900_v47, %v1664_v42  ;;  %v3146_v42 = vld [vmem:[#allocation14 + $0x20] ss:$8 sps:$4 sm:$0xff]   ;;  %v3151_v2 = vld [vmem:[#allocation14 + $0x124] ss:$8 sps:$4 sm:$0xff]  }
 0x40f   :  { %2625 = vmatpush1.bf16.msra.mxu1 %v3146_v42  ;;  %2665 = vmatprep.subr.bf16.mxu0 %v3151_v2  ;;  %v3206_v42 = vld [vmem:[#allocation14 + $0x80] ss:$8 sps:$4 sm:$0xff]  }
 0x410   :  { %v1722_v57 = vsub.f32 %v3933_v43, %v1721_v49  ;;  %v1666_v17 = vmul.f32 %v4006_v50, %v4006_v50  ;;  %v3149_v49 = vld [vmem:[#allocation14 + $0x120] ss:$8 sps:$4 sm:$0xff]  }
 0x411   :  { %v1691_v5 = vpop.xlane.xlu1 %1690  ;;  %2666 = vmatpush1.bf16.msra.mxu0 %v3149_v49  ;;  %v3209_v2 = vld [vmem:[#allocation14 + $0x180] ss:$8 sps:$4 sm:$0xff]   ;;  %v3214_v49 = vld [vmem:[#allocation14 + $0x274] ss:$8 sps:$4 sm:$0xff]  }
 0x412   :  { %v1692_v34 = vmul.f32 0.012345679, %v1691_v5  ;;  %v1667_v0 = vsel %vm251_vm1, %v1666_v17, 0.0  ;;  %v4013_v4 = vmul.f32 %v3900_v47, %v1722_v57  ;;  %v3154_v57 = vld [vmem:[#allocation14 + $0x14] ss:$8 sps:$4 sm:$0xff]  }
 0x413   :  { %1668 = vadd.xlane.f32.xlu1 %v1667_v0  ;;  %v3152_v17 = vld [vmem:[#allocation14 + $0x10] ss:$8 sps:$4 sm:$0xff]   ;;  %2626 = vmatprep.subr.bf16.mxu1 %v3154_v57  ;;  %v3157_v5 = vld [vmem:[#allocation14 + $0x114] ss:$8 sps:$4 sm:$0xff]   ;;  %v3160_v0 = vld [vmem:[#allocation14 + $0x4] ss:$8 sps:$4 sm:$0xff]  }
 0x414   :  { %v1693_v56 = vsub.f32 %v3937_v63, %v1692_v34  ;;  %v1724_v9 = vmul.f32 %v4013_v4, %v4013_v4  ;;  %2627 = vmatpush1.bf16.msra.mxu1 %v3152_v17  ;;  %v3155_v34 = vld [vmem:[#allocation14 + $0x110] ss:$8 sps:$4 sm:$0xff]   ;;  %2667 = vmatprep.subr.bf16.mxu0 %v3157_v5  ;;  %v3218_v57 = vld [vmem:[#allocation14 + $0x374] ss:$8 sps:$4 sm:$0xff]  }
 0x415   :  { %v1749_v13 = vpop.xlane.xlu1 %1748  ;;  %2668 = vmatpush1.bf16.msra.mxu0 %v3155_v34  ;;  %2628 = vmatprep.subr.bf16.mxu1 %v3160_v0 }
 0x416   :  { %v1750_v43 = vmul.f32 0.012345679, %v1749_v13  ;;  %v1725_v19 = vsel %vm251_vm1, %v1724_v9, 0.0  ;;  %v4020_v59 = vmul.f32 %v3900_v47, %v1693_v56  ;;  %v3158_v56 = vld [vmem:[#allocation14] ss:$8 sps:$4 sm:$0xff]  }
 0x417   :  { %1726 = vadd.xlane.f32.xlu1 %v1725_v19  ;;  %v3163_v9 = vld [vmem:[#allocation14 + $0x104] ss:$8 sps:$4 sm:$0xff]   ;;  %v3166_v13 = vld [vmem:[#allocation14 + $0xf4] ss:$8 sps:$4 sm:$0xff]   ;;  %v3167_v19 = vld [vmem:[#allocation14 + $0x1f0] ss:$8 sps:$4 sm:$0xff]  }
 0x418   :  { %v1751_v62 = vsub.f32 %v3943_v12, %v1750_v43  ;;  %v1695_v63 = vmul.f32 %v4020_v59, %v4020_v59  ;;  %2629 = vmatpush1.bf16.msra.mxu1 %v3158_v56  ;;  %2669 = vmatprep.subr.bf16.mxu0 %v3163_v9  ;;  %v3169_v43 = vld [vmem:[#allocation14 + $0x1f4] ss:$8 sps:$4 sm:$0xff]  }
 0x419   :  { %2670 = vmatpush1.bf16.msra.mxu0 %v3161_v15  ;;  %2630 = vmatprep.subr.bf16.mxu1 %v3166_v13  ;;  %v4037_v17 = vpop.permute.xlu1 %1680 }
 0x41a   :  { %v1696_v29 = vsel %vm251_vm1, %v1695_v63, 0.0  ;;  %v4027_v6 = vmul.f32 %v3900_v47, %v1751_v62  ;;  %2671 = vmatprep.subr.bf16.mxu0 %v3169_v43  ;;  %v3175_v62 = vld [vmem:[#allocation14 + $0x1e4] ss:$8 sps:$4 sm:$0xff]   ;;  %v3173_v63 = vld [vmem:[#allocation14 + $0x1e0] ss:$8 sps:$4 sm:$0xff]  }
 0x41b   :  { %1697 = vadd.xlane.f32.xlu0 %v1696_v29  ;;  %v3179_v29 = vld [vmem:[#allocation14 + $0x1d0] ss:$8 sps:$4 sm:$0xff]  }
 0x41c   :  { %v1753_v12 = vmul.f32 %v4027_v6, %v4027_v6  ;;  %2631 = vmatpush2.bf16.msra.mxu1 %v3164_v18 }
 0x41d   :  { %2672 = vmatpush2.bf16.msra.mxu0 %v3167_v19  ;;  %2632 = vmatprep.subr.bf16.mxu1 %v3172_v20 }
 0x41e   :  { %v1754_v32 = vsel %vm251_vm1, %v1753_v12, 0.0  ;;  %2673 = vmatprep.subr.bf16.mxu0 %v3175_v62  ;;  %v3187_v12 = vld [vmem:[#allocation14 + $0x1c4] ss:$8 sps:$4 sm:$0xff]  }
 0x41f   :  { %1755 = vadd.xlane.f32.xlu0 %v1754_v32  ;;  %v3193_v32 = vld [vmem:[#allocation14 + $0x1b4] ss:$8 sps:$4 sm:$0xff]  }
 0x420   :  { %2633 = vmatpush2.bf16.msra.mxu1 %v3170_v48 }
 0x421   :  { %2674 = vmatpush2.bf16.msra.mxu0 %v3173_v63  ;;  %2634 = vmatprep.subr.bf16.mxu1 %v3178_v39  ;;  %v1623_v39 = vpop.permute.xlu0 %1622 }
 0x422   :  { %2675 = vmatprep.subr.bf16.mxu0 %v3181_v38 }
 0x425   :  { %2676 = vmatpush2.bf16.msra.mxu0 %v3179_v29 }
 0x426   :  { %2677 = vmatprep.subr.bf16.mxu0 %v3187_v12 }
 0x428   :  { %1738 = vperm.xlu1 %3107, %v3885_v44  }
 0x42c   :  { %3108 = vset.pattern.permute.xlu1 %v3537_v46 }
 0x42d   :  { %1767 = vperm.xlu1 %3108, %v3885_v44  }
 0x435   :  { %1709 = vperm.xlu0 %3106, %v3885_v44   ;;  %v3176_v44 = vld [vmem:[#allocation14 + $0xd0] ss:$8 sps:$4 sm:$0xff]  }
 0x436   :  { %2635 = vmatpush2.bf16.msra.mxu1 %v3176_v44 }
 0x437   :  { %2636 = vmatprep.subr.bf16.mxu1 %v3184_v28 }
 0x439   :  { %3109 = vset.pattern.permute.xlu0 %v3537_v46  ;;  %v3185_v46 = vld [vmem:[#allocation14 + $0x1c0] ss:$8 sps:$4 sm:$0xff]  }
 0x43a   :  { %2637 = vmatpush2.bf16.msra.mxu1 %v3182_v35  ;;  %2678 = vmatpush2.bf16.msra.mxu0 %v3185_v46 }
 0x43b   :  { %2638 = vmatprep.subr.bf16.mxu1 %v3190_v33  ;;  %2679 = vmatprep.subr.bf16.mxu0 %v3193_v32 }
 0x43e   :  { %2639 = vmatpush2.bf16.msra.mxu1 %v3188_v37  ;;  %2680 = vmatpush2.bf16.msra.mxu0 %v3191_v53 }
 0x43f   :  { %2640 = vmatprep.subr.bf16.mxu1 %v3196_v14  ;;  %2681 = vmatprep.subr.bf16.mxu0 %v3199_v16 }
 0x442   :  { %2641 = vmatpush2.bf16.msra.mxu1 %v3194_v54  ;;  %2682 = vmatpush2.bf16.msra.mxu0 %v3197_v27 }
 0x443   :  { %2642 = vmatprep.subr.bf16.mxu1 %v3202_v41  ;;  %2683 = vmatprep.subr.bf16.mxu0 %v3205_v61 }
 0x446   :  { %2643 = vmatpush2.bf16.msra.mxu1 %v3200_v1  ;;  %2684 = vmatpush2.bf16.msra.mxu0 %v3203_v3 }
 0x447   :  { %2644 = vmatprep.subr.bf16.mxu1 %v3208_v58  ;;  %2685 = vmatprep.subr.bf16.mxu0 %v3211_v60 }
 0x44a   :  { %2645 = vmatpush2.bf16.msra.mxu1 %v3206_v42  ;;  %2686 = vmatpush2.bf16.msra.mxu0 %v3209_v2 }
 0x44b   :  { %2696 = vmatprep.subr.bf16.mxu1 %v3214_v49  ;;  %2737 = vmatprep.subr.bf16.mxu0 %v3218_v57 }
 0x45b   :  { %v1551_v5 = vpop.xlane.xlu1 %1550 }
 0x45c   :  { %v1552_v34 = vmul.f32 0.012345679, %v1551_v5 }
 0x45e   :  { %v1553_v0 = vadd.f32 1e-05, %v1552_v34 }
 0x45f   :  { %v1611_v56 = vpop.xlane.xlu1 %1610 }
 0x460   :  { %3311 = vrsqrt.f32 %v1553_v0  ;;  %v1612_v9 = vmul.f32 0.012345679, %v1611_v56 }
 0x462   :  { %v1613_v15 = vadd.f32 1e-05, %v1612_v9 }
 0x464   :  { %3313 = vrsqrt.f32 %v1613_v15 }
 0x46d   :  { %v3312_v13 = vpop.eup %3311 }
 0x46e   :  { %v1555_v18 = vmul.f32 %v3312_v13, %v3977_v40 }
 0x470   :  { %v1561_v43 = vmul.f32 %v3952_v21, %v1555_v18 }
 0x471   :  { %v3314_v19 = vpop.eup %3313 }
 0x472   :  { %v1567_v20 = vadd.f32 %v3968_v51, %v1561_v43  ;;  %v1615_v48 = vmul.f32 %v3314_v19, %v3980_v45 }
 0x474   :  { %v1568_v62 = vmax.f32 %v1567_v20, 0.0  ;;  %v1620_v63 = vmul.f32 %v3954_v25, %v1615_v48 }
 0x476   :  { %v1569_v44 = vmul.f32 %v3900_v47, %v1568_v62  ;;  %v1625_v38 = vadd.f32 %v1623_v39, %v1620_v63 }
 0x478   :  { %v1570_v29 = vpack.c.bf16 %v1569_v44, %v1569_v44  ;;  %v1626_v28 = vmax.f32 %v1625_v38, 0.0 }
 0x47a   :  { %1571 = vst [vmem:[#allocation2] sm:$0x1] %v1570_v29  ;;  %v1627_v35 = vmul.f32 %v3900_v47, %v1626_v28 }
 0x47c   :  { %v1628_v40 = vpack.c.bf16 %v1627_v35, %v1627_v35 }
 0x47e   :  { %1629 = vst [vmem:[#allocation2 + $0x2] sm:$0x1] %v1628_v40 }
 0x490   :  { %v1582_v21 = vpop.xlane.xlu1 %1581 }
 0x491   :  { %v1583_v12 = vmul.f32 0.012345679, %v1582_v21 }
 0x493   :  { %v1584_v46 = vadd.f32 1e-05, %v1583_v12 }
 0x494   :  { %v1640_v51 = vpop.xlane.xlu0 %1639 }
 0x495   :  { %3315 = vrsqrt.f32 %v1584_v46  ;;  %v1641_v45 = vmul.f32 0.012345679, %v1640_v51 }
 0x497   :  { %v1642_v33 = vadd.f32 1e-05, %v1641_v45  ;;  %v3539_v45 = vmov 1966171168  }
 0x499   :  { %3317 = vrsqrt.f32 %v1642_v33  ;;  %v1919_v33 = vunpack.c.l.s4 %v3539_v45  ;;  %v3279_v45 = vld [vmem:[#allocation14 + $0x2c0] ss:$8 sps:$4 sm:$0xff]  }
 0x49c   :  { %v1669_v25 = vpop.xlane.xlu1 %1668 }
 0x49d   :  { %v1670_v37 = vmul.f32 0.012345679, %v1669_v25 }
 0x49f   :  { %v1671_v32 = vadd.f32 1e-05, %v1670_v37 }
 0x4a0   :  { %v1727_v53 = vpop.xlane.xlu1 %1726 }
 0x4a1   :  { %3319 = vrsqrt.f32 %v1671_v32  ;;  %v1728_v54 = vmul.f32 0.012345679, %v1727_v53 }
 0x4a2   :  { %v3316_v14 = vpop.eup %3315 }
 0x4a3   :  { %v1586_v16 = vmul.f32 %v3316_v14, %v3992_v52  ;;  %v1729_v27 = vadd.f32 1e-05, %v1728_v54 }
 0x4a4   :  { %v1698_v41 = vpop.xlane.xlu0 %1697  ;;  %v1739_v48 = vpop.permute.xlu1 %1738 }
 0x4a5   :  { %v1591_v61 = vmul.f32 %v3972_v36, %v1586_v16  ;;  %3321 = vrsqrt.f32 %v1729_v27  ;;  %v1699_v1 = vmul.f32 0.012345679, %v1698_v41  ;;  %v3212_v41 = vld [vmem:[#allocation14 + $0x270] ss:$8 sps:$4 sm:$0xff]  }
 0x4a6   :  { %v3318_v58 = vpop.eup %3317 }
 0x4a7   :  { %v1596_v3 = vadd.f32 %v3970_v11, %v1591_v61  ;;  %v1644_v60 = vmul.f32 %v3318_v58, %v3999_v55  ;;  %v1700_v42 = vadd.f32 1e-05, %v1699_v1 }
 0x4a8   :  { %v1756_v2 = vpop.xlane.xlu0 %1755  ;;  %v1768_v21 = vpop.permute.xlu1 %1767 }
 0x4a9   :  { %v1597_v49 = vmax.f32 %v1596_v3, 0.0  ;;  %v1649_v57 = vmul.f32 %v3957_v24, %v1644_v60  ;;  %3323 = vrsqrt.f32 %v1700_v42  ;;  %v1757_v5 = vmul.f32 0.012345679, %v1756_v2  ;;  %v3216_v3 = vld [vmem:[#allocation14 + $0x370] ss:$8 sps:$4 sm:$0xff]  }
 0x4aa   :  { %v3221_v60 = vld [vmem:[#allocation14 + $0x264] ss:$8 sps:$4 sm:$0xff]  }
 0x4ab   :  { %v1598_v52 = vmul.f32 %v3900_v47, %v1597_v49  ;;  %v1654_v34 = vadd.f32 %v3988_v23, %v1649_v57  ;;  %v1758_v0 = vadd.f32 1e-05, %v1757_v5  ;;  %v3224_v2 = vld [vmem:[#allocation14 + $0x364] ss:$8 sps:$4 sm:$0xff]   ;;  %v3227_v57 = vld [vmem:[#allocation14 + $0x254] ss:$8 sps:$4 sm:$0xff]  }
 0x4ac   :  { %v3222_v5 = vld [vmem:[#allocation14 + $0x360] ss:$8 sps:$4 sm:$0xff]  }
 0x4ad   :  { %v1599_v36 = vpack.c.bf16 %v1598_v52, %v1598_v52  ;;  %v1655_v56 = vmax.f32 %v1654_v34, 0.0  ;;  %3325 = vrsqrt.f32 %v1758_v0  ;;  %v3230_v52 = vld [vmem:[#allocation14 + $0x354] ss:$8 sps:$4 sm:$0xff]   ;;  %v3225_v34 = vld [vmem:[#allocation14 + $0x250] ss:$8 sps:$4 sm:$0xff]  }
 0x4ae   :  { %v3320_v9 = vpop.eup %3319  ;;  %v3233_v0 = vld [vmem:[#allocation14 + $0x244] ss:$8 sps:$4 sm:$0xff]  }
 0x4af   :  { %1600 = vst [vmem:[#allocation2 + $0x1] sm:$0x1] %v1599_v36  ;;  %v1656_v11 = vmul.f32 %v3900_v47, %v1655_v56  ;;  %v1673_v55 = vmul.f32 %v3320_v9, %v4006_v50  ;;  %v3228_v36 = vld [vmem:[#allocation14 + $0x350] ss:$8 sps:$4 sm:$0xff]   ;;  %v3236_v56 = vld [vmem:[#allocation14 + $0x344] ss:$8 sps:$4 sm:$0xff]  }
 0x4b0   :  { %v1710_v29 = vpop.permute.xlu0 %1709  ;;  %v3231_v9 = vld [vmem:[#allocation14 + $0x240] ss:$8 sps:$4 sm:$0xff]  }
 0x4b1   :  { %v1657_v15 = vpack.c.bf16 %v1656_v11, %v1656_v11  ;;  %v1678_v13 = vmul.f32 %v3960_v26, %v1673_v55  ;;  %v3239_v11 = vld [vmem:[#allocation14 + $0x234] ss:$8 sps:$4 sm:$0xff]   ;;  %v3234_v55 = vld [vmem:[#allocation14 + $0x340] ss:$8 sps:$4 sm:$0xff]  }
 0x4b2   :  { %v3322_v24 = vpop.eup %3321 }
 0x4b3   :  { %1658 = vst [vmem:[#allocation2 + $0x3] sm:$0x1] %v1657_v15  ;;  %v1683_v18 = vadd.f32 %v4037_v17, %v1678_v13  ;;  %v1731_v43 = vmul.f32 %v3322_v24, %v4013_v4  ;;  %v3242_v15 = vld [vmem:[#allocation14 + $0x334] ss:$8 sps:$4 sm:$0xff]   ;;  %v3237_v13 = vld [vmem:[#allocation14 + $0x230] ss:$8 sps:$4 sm:$0xff]  }
 0x4b4   :  { %v3245_v24 = vld [vmem:[#allocation14 + $0x224] ss:$8 sps:$4 sm:$0xff]  }
 0x4b5   :  { %v1684_v23 = vmax.f32 %v1683_v18, 0.0  ;;  %v1736_v19 = vmul.f32 %v3964_v30, %v1731_v43  ;;  %v3240_v18 = vld [vmem:[#allocation14 + $0x330] ss:$8 sps:$4 sm:$0xff]   ;;  %v3248_v43 = vld [vmem:[#allocation14 + $0x324] ss:$8 sps:$4 sm:$0xff]  }
 0x4b6   :  { %v3324_v20 = vpop.eup %3323 }
 0x4b7   :  { %v1685_v62 = vmul.f32 %v3900_v47, %v1684_v23  ;;  %v1741_v63 = vadd.f32 %v1739_v48, %v1736_v19  ;;  %v1702_v39 = vmul.f32 %v3324_v20, %v4020_v59  ;;  %v3243_v23 = vld [vmem:[#allocation14 + $0x220] ss:$8 sps:$4 sm:$0xff]   ;;  %v3251_v19 = vld [vmem:[#allocation14 + $0x214] ss:$8 sps:$4 sm:$0xff]  }
 0x4b8   :  { %v3246_v20 = vld [vmem:[#allocation14 + $0x320] ss:$8 sps:$4 sm:$0xff]   ;;  %v3254_v48 = vld [vmem:[#allocation14 + $0x314] ss:$8 sps:$4 sm:$0xff]  }
 0x4b9   :  { %v1686_v50 = vpack.c.bf16 %v1685_v62, %v1685_v62  ;;  %v1742_v44 = vmax.f32 %v1741_v63, 0.0  ;;  %v1707_v26 = vmul.f32 %v3962_v22, %v1702_v39  ;;  %v3249_v62 = vld [vmem:[#allocation14 + $0x210] ss:$8 sps:$4 sm:$0xff]   ;;  %v3257_v63 = vld [vmem:[#allocation14 + $0x204] ss:$8 sps:$4 sm:$0xff]  }
 0x4ba   :  { %v3326_v38 = vpop.eup %3325  ;;  %v3252_v39 = vld [vmem:[#allocation14 + $0x310] ss:$8 sps:$4 sm:$0xff]  }
 0x4bb   :  { %1687 = vst [vmem:[#allocation2 + $0x4] sm:$0x1] %v1686_v50  ;;  %v1743_v17 = vmul.f32 %v3900_v47, %v1742_v44  ;;  %v1760_v4 = vmul.f32 %v3326_v38, %v4027_v6  ;;  %v1712_v28 = vadd.f32 %v1710_v29, %v1707_v26  ;;  %v1920_v6 = vunpack.c.0.s8 %v1919_v33  ;;  %v3260_v50 = vld [vmem:[#allocation14 + $0x304] ss:$8 sps:$4 sm:$0xff]   ;;  %v3255_v44 = vld [vmem:[#allocation14 + $0x200] ss:$8 sps:$4 sm:$0xff]  }
 0x4bc   :  { %v3263_v26 = vld [vmem:[#allocation14 + $0x2f4] ss:$8 sps:$4 sm:$0xff]   ;;  %v3258_v38 = vld [vmem:[#allocation14 + $0x300] ss:$8 sps:$4 sm:$0xff]  }
 0x4bd   :  { %v1744_v30 = vpack.c.bf16 %v1743_v17, %v1743_v17  ;;  %v1765_v35 = vmul.f32 %v3966_v31, %v1760_v4  ;;  %v1713_v40 = vmax.f32 %v1712_v28, 0.0  ;;  %v1923_v37 = vsub.s32 %v1920_v6, %v3658_v7  ;;  %v3219_v7 = vld [vmem:[#allocation14 + $0x260] ss:$8 sps:$4 sm:$0xff]   ;;  %v3266_v29 = vld [vmem:[#allocation14 + $0x3f4] ss:$8 sps:$4 sm:$0xff]  }
 0x4be   :  { %v3261_v17 = vld [vmem:[#allocation14 + $0x2f0] ss:$8 sps:$4 sm:$0xff]   ;;  %v3269_v4 = vld [vmem:[#allocation14 + $0x2e4] ss:$8 sps:$4 sm:$0xff]   ;;  %v3287_v33 = vld [vmem:[#allocation14 + $0x2b4] ss:$8 sps:$4 sm:$0xff]  }
 0x4bf   :  { %1745 = vst [vmem:[#allocation2 + $0x6] sm:$0x1] %v1744_v30  ;;  %v1770_v12 = vadd.f32 %v1768_v21, %v1765_v35  ;;  %v1714_v59 = vmul.f32 %v3900_v47, %v1713_v40  ;;  %v3264_v28 = vld [vmem:[#allocation14 + $0x3f0] ss:$8 sps:$4 sm:$0xff]   ;;  %v3272_v30 = vld [vmem:[#allocation14 + $0x3e4] ss:$8 sps:$4 sm:$0xff]  }
 0x4c0   :  { %v3267_v35 = vld [vmem:[#allocation14 + $0x2e0] ss:$8 sps:$4 sm:$0xff]   ;;  %v3275_v40 = vld [vmem:[#allocation14 + $0x2d4] ss:$8 sps:$4 sm:$0xff]  }
 0x4c1   :  { %v1771_v46 = vmax.f32 %v1770_v12, 0.0  ;;  %v1715_v51 = vpack.c.bf16 %v1714_v59, %v1714_v59  ;;  %v3270_v21 = vld [vmem:[#allocation14 + $0x3e0] ss:$8 sps:$4 sm:$0xff]   ;;  %v3278_v12 = vld [vmem:[#allocation14 + $0x3d4] ss:$8 sps:$4 sm:$0xff]  }
 0x4c2   :  { %v3273_v59 = vld [vmem:[#allocation14 + $0x2d0] ss:$8 sps:$4 sm:$0xff]   ;;  %v3290_v6 = vld [vmem:[#allocation14 + $0x3b4] ss:$8 sps:$4 sm:$0xff]  }
 0x4c3   :  { %v1772_v22 = vmul.f32 %v3900_v47, %v1771_v46  ;;  %1716 = vst [vmem:[#allocation2 + $0x5] sm:$0x1] %v1715_v51  ;;  %v3281_v46 = vld [vmem:[#allocation14 + $0x2c4] ss:$8 sps:$4 sm:$0xff]   ;;  %v3276_v51 = vld [vmem:[#allocation14 + $0x3d0] ss:$8 sps:$4 sm:$0xff]  }
 0x4c5   :  { %v1773_v25 = vpack.c.bf16 %v1772_v22, %v1772_v22  ;;  %v3284_v22 = vld [vmem:[#allocation14 + $0x3c4] ss:$8 sps:$4 sm:$0xff]  }
 0x4c7   :  { %1774 = vst [vmem:[#allocation2 + $0x7] sm:$0x1] %v1773_v25  ;;  %v3282_v25 = vld [vmem:[#allocation14 + $0x3c0] ss:$8 sps:$4 sm:$0xff]  }
 0x4ce   :  { %v1775_v32 = vld [vmem:[#allocation2] sm:$0xff] }
 0x4cf   :  { %v1924_v31 = vrot.slane %v1775_v32, %v1923_v37  ;;  %v1917_v53 = vcombine.high %v1775_v32, %v1775_v32  ;;  %v3293_v32 = vld [vmem:[#allocation14 + $0x2a4] ss:$8 sps:$4 sm:$0xff]  }
 0x4d1   :  { %v1932_v54 = vcombine.high %v1924_v31, %v1924_v31  ;;  %v1931_v14 = vrot.slane %v1917_v53, %v1923_v37  ;;  %v1940_v16 = vrot.slane %v1924_v31, %v1923_v37  ;;  %v3288_v31 = vld [vmem:[#allocation14 + $0x3b0] ss:$8 sps:$4 sm:$0xff]   ;;  %v3296_v53 = vld [vmem:[#allocation14 + $0x3a4] ss:$8 sps:$4 sm:$0xff]  }
 0x4d3   :  { %v1954_v27 = vrot.slane %v1932_v54, %v1923_v37  ;;  %v1933_v61 = vcombine.high %v1931_v14, %v1931_v14  ;;  %v4068_v1 = vrot.slane %v1931_v14, %v1923_v37  ;;  %v1962_v42 = vcombine.high %v1940_v16, %v1940_v16  ;;  %v3291_v54 = vld [vmem:[#allocation14 + $0x2a0] ss:$8 sps:$4 sm:$0xff]   ;;  %v3299_v14 = vld [vmem:[#allocation14 + $0x294] ss:$8 sps:$4 sm:$0xff]  }
 0x4d5   :  { %2646 = vmatprep.mubr.bf16.mxu1 %v1954_v27  ;;  %v1964_v47 = vcombine.high %v1954_v27, %v1954_v27  ;;  %v1961_v58 = vrot.slane %v1933_v61, %v1923_v37  ;;  %v3285_v37 = vld [vmem:[#allocation14 + $0x2b0] ss:$8 sps:$4 sm:$0xff]   ;;  %v3302_v27 = vld [vmem:[#allocation14 + $0x394] ss:$8 sps:$4 sm:$0xff]   ;;  %v3305_v61 = vld [vmem:[#allocation14 + $0x284] ss:$8 sps:$4 sm:$0xff]  }
 0x4d6   :  { %2647 = vmatmul.mubr.bf16.vlgmr.msra.gmra.mxu1 %v1940_v16  ;;  %v3294_v16 = vld [vmem:[#allocation14 + $0x3a0] ss:$8 sps:$4 sm:$0xff]  }
 0x4d7   :  { %2697 = vmatpush1.bf16.msra.mxu1 %v3212_v41  ;;  %2687 = vmatprep.mubr.bf16.mxu0 %v1964_v47  ;;  %v1965_v49 = vcombine.high %v1961_v58, %v1961_v58  ;;  %v3297_v41 = vld [vmem:[#allocation14 + $0x290] ss:$8 sps:$4 sm:$0xff]  }
 0x4d8   :  { %2728 = vmatprep.mubr.bf16.mxu1 %v1961_v58  ;;  %2688 = vmatmul.mubr.bf16.vlgmr.msra.gmra.mxu0 %v1962_v42  ;;  %v3300_v47 = vld [vmem:[#allocation14 + $0x390] ss:$8 sps:$4 sm:$0xff]   ;;  %v3308_v58 = vld [vmem:[#allocation14 + $0x384] ss:$8 sps:$4 sm:$0xff]   ;;  %v1963_v42 = vcombine.high %v4068_v1, %v4068_v1 }
 0x4d9   :  { %2738 = vmatpush1.bf16.msra.mxu0 %v3216_v3  ;;  %2698 = vmatprep.subr.bf16.mxu1 %v3221_v60  ;;  %v3303_v3 = vld [vmem:[#allocation14 + $0x280] ss:$8 sps:$4 sm:$0xff]  }
 0x4da   :  { %2769 = vmatprep.mubr.bf16.mxu0 %v1965_v49  ;;  %2739 = vmatprep.subr.bf16.mxu0 %v3224_v2  ;;  %v3306_v60 = vld [vmem:[#allocation14 + $0x380] ss:$8 sps:$4 sm:$0xff]  }
 0x4db   :  { %2699 = vmatpush1.bf16.msra.mxu1 %v3219_v7 }
 0x4dc   :  { %2700 = vmatprep.subr.bf16.mxu1 %v3227_v57 }
 0x4dd   :  { %2740 = vmatpush1.bf16.msra.mxu0 %v3222_v5 }
 0x4de   :  { %2741 = vmatprep.subr.bf16.mxu0 %v3230_v52 }
 0x4df   :  { %2701 = vmatpush1.bf16.msra.mxu1 %v3225_v34 }
 0x4e0   :  { %2702 = vmatprep.subr.bf16.mxu1 %v3233_v0 }
 0x4e1   :  { %2742 = vmatpush1.bf16.msra.mxu0 %v3228_v36  ;;  %v1904_v36 = vld [vmem:[#allocation16] sm:$0x3] }
 0x4e2   :  { %2743 = vmatprep.subr.bf16.mxu0 %v3236_v56  ;;  %v1909_v56 = vrot.slane %v1904_v36, %v3661_v8 }
 0x4e3   :  { %2703 = vmatpush1.bf16.msra.mxu1 %v3231_v9  ;;  %v1913_v9 = vrot.slane %v1904_v36, %v3667_v10 }
 0x4e4   :  { %2704 = vmatprep.subr.bf16.mxu1 %v3239_v11 }
 0x4e5   :  { %2744 = vmatpush1.bf16.msra.mxu0 %v3234_v55 }
 0x4e6   :  { %2745 = vmatprep.subr.bf16.mxu0 %v3242_v15 }
 0x4e7   :  { %2705 = vmatpush1.bf16.msra.mxu1 %v3237_v13 }
 0x4e8   :  { %2706 = vmatprep.subr.bf16.mxu1 %v3245_v24 }
 0x4e9   :  { %2746 = vmatpush1.bf16.msra.mxu0 %v3240_v18 }
 0x4ea   :  { %2747 = vmatprep.subr.bf16.mxu0 %v3248_v43 }
 0x4eb   :  { %2707 = vmatpush1.bf16.msra.mxu1 %v3243_v23 }
 0x4ec   :  { %2708 = vmatprep.subr.bf16.mxu1 %v3251_v19 }
 0x4ed   :  { %2748 = vmatpush1.bf16.msra.mxu0 %v3246_v20 }
 0x4ee   :  { %2749 = vmatprep.subr.bf16.mxu0 %v3254_v48 }
 0x4ef   :  { %2709 = vmatpush1.bf16.msra.mxu1 %v3249_v62 }
 0x4f0   :  { %2710 = vmatprep.subr.bf16.mxu1 %v3257_v63 }
 0x4f1   :  { %2750 = vmatpush1.bf16.msra.mxu0 %v3252_v39 }
 0x4f2   :  { %2751 = vmatprep.subr.bf16.mxu0 %v3260_v50 }
 0x4f3   :  { %2711 = vmatpush1.bf16.msra.mxu1 %v3255_v44 }
 0x4f4   :  { %2712 = vmatprep.subr.bf16.mxu1 %v3263_v26 }
 0x4f5   :  { %2752 = vmatpush1.bf16.msra.mxu0 %v3258_v38 }
 0x4f6   :  { %2753 = vmatprep.subr.bf16.mxu0 %v3266_v29 }
 0x4f7   :  { %2713 = vmatpush2.bf16.msra.mxu1 %v3261_v17 }
 0x4f8   :  { %2714 = vmatprep.subr.bf16.mxu1 %v3269_v4 }
 0x4f9   :  { %2754 = vmatpush2.bf16.msra.mxu0 %v3264_v28 }
 0x4fa   :  { %2755 = vmatprep.subr.bf16.mxu0 %v3272_v30 }
 0x4fb   :  { %2715 = vmatpush2.bf16.msra.mxu1 %v3267_v35 }
 0x4fc   :  { %2716 = vmatprep.subr.bf16.mxu1 %v3275_v40 }
 0x4fd   :  { %2756 = vmatpush2.bf16.msra.mxu0 %v3270_v21 }
 0x4fe   :  { %2757 = vmatprep.subr.bf16.mxu0 %v3278_v12 }
 0x4ff   :  { %2717 = vmatpush2.bf16.msra.mxu1 %v3273_v59 }
 0x500   :  { %2718 = vmatprep.subr.bf16.mxu1 %v3281_v46 }
 0x501   :  { %2758 = vmatpush2.bf16.msra.mxu0 %v3276_v51 }
 0x502   :  { %2759 = vmatprep.subr.bf16.mxu0 %v3284_v22 }
 0x503   :  { %2719 = vmatpush2.bf16.msra.mxu1 %v3279_v45 }
 0x504   :  { %2720 = vmatprep.subr.bf16.mxu1 %v3287_v33 }
 0x505   :  { %2760 = vmatpush2.bf16.msra.mxu0 %v3282_v25 }
 0x506   :  { %2761 = vmatprep.subr.bf16.mxu0 %v3290_v6 }
 0x507   :  { %2721 = vmatpush2.bf16.msra.mxu1 %v3285_v37 }
 0x508   :  { %2722 = vmatprep.subr.bf16.mxu1 %v3293_v32 }
 0x509   :  { %2762 = vmatpush2.bf16.msra.mxu0 %v3288_v31 }
 0x50a   :  { %2763 = vmatprep.subr.bf16.mxu0 %v3296_v53 }
 0x50b   :  { %2723 = vmatpush2.bf16.msra.mxu1 %v3291_v54 }
 0x50c   :  { %2724 = vmatprep.subr.bf16.mxu1 %v3299_v14 }
 0x50d   :  { %2764 = vmatpush2.bf16.msra.mxu0 %v3294_v16 }
 0x50e   :  { %2765 = vmatprep.subr.bf16.mxu0 %v3302_v27 }
 0x50f   :  { %2725 = vmatpush2.bf16.msra.mxu1 %v3297_v41 }
 0x510   :  { %2726 = vmatprep.subr.bf16.mxu1 %v3305_v61 }
 0x511   :  { %2766 = vmatpush2.bf16.msra.mxu0 %v3300_v47 }
 0x512   :  { %2767 = vmatprep.subr.bf16.mxu0 %v3308_v58 }
 0x513   :  { %2727 = vmatpush2.bf16.msra.mxu1 %v3303_v3 }
 0x515   :  { %2768 = vmatpush2.bf16.msra.mxu0 %v3306_v60 }
 0x516   :  { %2729 = vmatmul.mubr.bf16.vlgmr.msra.gmra.mxu1 %v4068_v1 }
 0x518   :  { %2770 = vmatmul.mubr.bf16.vlgmr.msra.gmra.mxu0 %v1963_v42 }
 0x596   :  { %v2648_v2 = vpop.f32.mrf.mxu1 }
 0x597   :  { %v2649_v11 = vadd.f32 %v2648_v2, %v1909_v56 }
 0x598   :  { %v2650_v7 = vpop.f32.mrf.mxu1  ;;  %v2689_v49 = vpop.f32.mrf.mxu0 }
 0x599   :  { %v2651_v55 = vadd.f32 %v2650_v7, %v1913_v9  ;;  %v2690_v15 = vadd.f32 %v2689_v49, %v2649_v11 }
 0x59a   :  { %v2652_v57 = vpop.f32.mrf.mxu1  ;;  %v2691_v5 = vpop.f32.mrf.mxu0 }
 0x59b   :  { %v2692_v24 = vadd.f32 %v2691_v5, %v2651_v55 }
 0x59c   :  { %v2653_v52 = vpop.f32.mrf.mxu1  ;;  %v2693_v34 = vpop.f32.mrf.mxu0 }
 0x59e   :  { %v2694_v0 = vpop.f32.mrf.mxu0 }
 0x5d6   :  { %v2730_v13 = vpop.f32.mrf.mxu1 }
 0x5d7   :  { %v2731_v1 = vadd.f32 %v2730_v13, %v2690_v15 }
 0x5d8   :  { %v2732_v18 = vpop.f32.mrf.mxu1  ;;  %v2771_v43 = vpop.f32.mrf.mxu0 }
 0x5d9   :  { %v2733_v23 = vadd.f32 %v2732_v18, %v2692_v24  ;;  %v2772_v19 = vadd.f32 %v2771_v43, %v2731_v1 }
 0x5da   :  { %v2734_v20 = vpop.f32.mrf.mxu1  ;;  %v2773_v48 = vpop.f32.mrf.mxu0 }
 0x5db   :  { %v2774_v62 = vadd.f32 %v2773_v48, %v2733_v23  ;;  %v2778_v50 = vmax.f32 %v2772_v19, 0.0 }
 0x5dc   :  { %v2735_v63 = vpop.f32.mrf.mxu1  ;;  %v2775_v39 = vpop.f32.mrf.mxu0 }
 0x5dd   :  { %v2779_v44 = vmax.f32 %v2774_v62, 0.0 }
 0x5de   :  { %v2776_v8 = vpop.f32.mrf.mxu0 }
 0x5df   :  { %v2782_v26 = vcombine.low %v2778_v50, %v2779_v44 }
 0x5e1   :  { %3065 = vst.sshfl [vmem:[%s4094_s16] sm:$0x33 pattern:$0x76325410] %v2782_v26 }
 0x5e2   :  { %2796 = vsyncpa [#allocation4], 1 }
 0x5e3   :  { %2797 = vsyncpa [#allocation6], 1 }
 0x5e4   :  { %2798 = vsyncpa [#allocation9], 1 }
 0x5e5   :  { %2799 = vsyncpa [#allocation12], 1 }
 0x5e6   :  { %2800 = vsyncpa [#allocation15], 1 }

</bundles_post_ra>
